<compile_context>
chip_gen: v7x
topology: tpu7x:2x2x1
jax: 0.10.0
libtpu: 0.0.40
codegen_flags: <defaults>
</compile_context>

<pallas_src>
import functools

import jax
import jax.numpy as jnp
from jax.experimental import pallas as pl
from jax.experimental.pallas import tpu as pltpu


def _round_up(x, m):
    return ((x + m - 1) // m) * m


def lstm_kernel(seq_len, batch, x_ref, wih_ref, whh_ref, b_ref,
                h_out_ref, gx_ref):
    """Single-shot LSTM recurrence.

    x_ref:    (S*B, F)   time-major, batch-padded input
    wih_ref:  (F, 4H)    W_ih^T, gate-block padded
    whh_ref:  (H, 4H)    W_hh^T, gate-block padded
    b_ref:    (1, 4H)    b_ih + b_hh, gate-block padded
    h_out_ref:(B, H)     h_T (lane-dense output)
    gx_ref:   (S*B, 4H)  VMEM scratch: precomputed input projection
    """
    H = whh_ref.shape[0]               # padded hidden size (multiple of 128)

    # Phase 1: input projection for ALL timesteps in one big MXU matmul.
    gx_ref[...] = (
        jnp.dot(x_ref[...], wih_ref[...], preferred_element_type=jnp.float32)
        + b_ref[...])

    whh = whh_ref[...]                 # (H, 4H); stays resident for the loop

    def step(t, carry):
        h, c = carry
        row = pl.multiple_of(t * batch, 8)
        # gates: (B, 4H) in PyTorch gate order [i, f, g, o].
        gates = gx_ref[pl.ds(row, batch), :] + jnp.dot(
            h, whh, preferred_element_type=jnp.float32)
        i = jax.nn.sigmoid(gates[:, 0 * H:1 * H])
        f = jax.nn.sigmoid(gates[:, 1 * H:2 * H])
        g = jnp.tanh(gates[:, 2 * H:3 * H])
        o = jax.nn.sigmoid(gates[:, 3 * H:4 * H])
        c_new = f * c + i * g
        h_new = o * jnp.tanh(c_new)
        return (h_new, c_new)

    h0 = jnp.zeros((batch, H), jnp.float32)
    c0 = jnp.zeros((batch, H), jnp.float32)
    h_fin, _ = jax.lax.fori_loop(0, seq_len, step, (h0, c0),
                                 unroll=(seq_len <= 32))
    h_out_ref[...] = h_fin


def baseline_lstm_forward(x, params):
    """x: (B, S, F) float32.  Returns (B,) float32."""
    x = x.astype(jnp.float32)
    B, S, F = x.shape
    H = params["w_hh_t"].shape[0]

    Bp = _round_up(B, 8)               # sublane alignment
    Hp = _round_up(H, 128)             # lane alignment (gate slices)

    # --- pad parameters gate-block-wise: [i|f|g|o] each widened H -> Hp ---
    w_ih_t = params["w_ih_t"].reshape(F, 4, H)
    w_ih_t = jnp.pad(w_ih_t, ((0, 0), (0, 0), (0, Hp - H))).reshape(F, 4 * Hp)
    w_hh_t = params["w_hh_t"].reshape(H, 4, H)
    w_hh_t = jnp.pad(w_hh_t, ((0, Hp - H), (0, 0), (0, Hp - H))
                     ).reshape(Hp, 4 * Hp)
    b = params["b"].reshape(1, 4, H)
    b = jnp.pad(b, ((0, 0), (0, 0), (0, Hp - H))).reshape(1, 4 * Hp)

    # --- pad batch, go time-major, flatten for one big input projection ---
    xp = jnp.pad(x, ((0, Bp - B), (0, 0), (0, 0)))          # (Bp, S, F)
    x2d = jnp.transpose(xp, (1, 0, 2)).reshape(S * Bp, F)   # (S*Bp, F)

    kernel = functools.partial(lstm_kernel, S, Bp)
    h_fin = pl.pallas_call(
        kernel,
        out_shape=jax.ShapeDtypeStruct((Bp, Hp), jnp.float32),
        in_specs=[pl.BlockSpec(memory_space=pltpu.MemorySpace.VMEM)] * 4,
        out_specs=pl.BlockSpec(memory_space=pltpu.MemorySpace.VMEM),
        scratch_shapes=[pltpu.VMEM((S * Bp, 4 * Hp), jnp.float32)],
    )(x2d, w_ih_t, w_hh_t, b)

    # Linear head on hn = h_T done in XLA (kernel output stays lane-dense).
    hn = h_fin[:B, :H]
    out = hn @ params["w_lin_t"] + params["b_lin"]
    return out.reshape(-1)             # .flatten() -> (B,)


def init_params(key, num_sensors, hidden_units):
    """Deterministic init, same shapes as nn.LSTM/nn.Linear (uniform +-1/sqrt(H))."""
    H, F = hidden_units, num_sensors
    k = 1.0 / jnp.sqrt(jnp.float32(H))
    keys = jax.random.split(key, 6)
    w_ih = jax.random.uniform(keys[0], (4 * H, F), jnp.float32, -k, k)
    w_hh = jax.random.uniform(keys[1], (4 * H, H), jnp.float32, -k, k)
    b_ih = jax.random.uniform(keys[2], (4 * H,), jnp.float32, -k, k)
    b_hh = jax.random.uniform(keys[3], (4 * H,), jnp.float32, -k, k)
    w_lin = jax.random.uniform(keys[4], (1, H), jnp.float32, -k, k)
    b_lin = jax.random.uniform(keys[5], (1,), jnp.float32, -k, k)
    return {
        "w_ih_t": w_ih.T,                         # (F, 4H)
        "w_hh_t": w_hh.T,                         # (H, 4H)
        "b": (b_ih + b_hh).reshape(1, 4 * H),     # (1, 4H)
        "w_lin_t": w_lin.T,                       # (H, 1)
        "b_lin": b_lin.reshape(1, 1),             # (1, 1)
    }


def reference_forward(x, params):
    """Pure-JAX reference (lax.scan) mirroring torch.nn.LSTM semantics."""
    B, S, F = x.shape
    H = params["w_hh_t"].shape[0]
    h0 = jnp.zeros((B, H), jnp.float32)
    c0 = jnp.zeros((B, H), jnp.float32)

    def step(carry, x_t):
        h, c = carry
        gates = x_t @ params["w_ih_t"] + h @ params["w_hh_t"] + params["b"]
        i = jax.nn.sigmoid(gates[:, 0 * H:1 * H])
        f = jax.nn.sigmoid(gates[:, 1 * H:2 * H])
        g = jnp.tanh(gates[:, 2 * H:3 * H])
        o = jax.nn.sigmoid(gates[:, 3 * H:4 * H])
        c = f * c + i * g
        h = o * jnp.tanh(c)
        return (h, c), None

    (hn, _), _ = jax.lax.scan(step, (h0, c0), jnp.swapaxes(x, 0, 1))
    return (hn @ params["w_lin_t"] + params["b_lin"]).reshape(-1)


if __name__ == "__main__":
    batch, seq, num_sensors, hidden_units = 2, 8, 4, 32

    key = jax.random.PRNGKey(0)
    k_x, k_p = jax.random.split(key)
    x = jax.random.normal(k_x, (batch, seq, num_sensors), jnp.float32)
    params = init_params(k_p, num_sensors, hidden_units)

    out = baseline_lstm_forward(x, params)
    out = jax.block_until_ready(out)

    ref = reference_forward(x, params)
    assert out.shape == (batch,)
    assert jnp.allclose(out, ref, atol=1e-5, rtol=1e-5), (out, ref)

    print("KERNEL_OK")
</pallas_src>

<mosaic_0001>
module attributes {stable_mosaic.version = 11 : i64} {
  func.func @lstm_kernel(%arg0: memref<64x4xf32, #tpu.memory_space<vmem>>, %arg1: memref<4x512xf32, #tpu.memory_space<vmem>>, %arg2: memref<128x512xf32, #tpu.memory_space<vmem>>, %arg3: memref<1x512xf32, #tpu.memory_space<vmem>>, %arg4: memref<8x128xf32, #tpu.memory_space<vmem>>, %arg5: memref<64x512xf32, #tpu.memory_space<vmem>>) attributes {dimension_semantics = [], scalar_prefetch = 0 : i64, scratch_operands = 1 : i64, tpu.core_type = #tpu.core_type<tc>} {
    %c0 = arith.constant 0 : index
    %c0_0 = arith.constant 0 : index
    %0 = vector.load %arg0[%c0, %c0_0] : memref<64x4xf32, #tpu.memory_space<vmem>>, vector<64x4xf32>
    %c0_1 = arith.constant 0 : index
    %c0_2 = arith.constant 0 : index
    %1 = vector.load %arg1[%c0_1, %c0_2] : memref<4x512xf32, #tpu.memory_space<vmem>>, vector<4x512xf32>
    %cst = arith.constant dense<0.000000e+00> : vector<64x512xf32>
    %2 = tpu.matmul %0, %1, %cst {dimension_numbers = #tpu.dot_dimension_numbers<[1], [0], [0], [1], [0, 0, 1, 1], [], []>} : vector<64x4xf32>, vector<4x512xf32>, vector<64x512xf32> -> vector<64x512xf32>
    %c0_3 = arith.constant 0 : index
    %c0_4 = arith.constant 0 : index
    %3 = vector.load %arg3[%c0_3, %c0_4] : memref<1x512xf32, #tpu.memory_space<vmem>>, vector<1x512xf32>
    %4 = vector.broadcast %3 : vector<1x512xf32> to vector<64x512xf32>
    %5 = arith.addf %2, %4 : vector<64x512xf32>
    %c0_5 = arith.constant 0 : index
    %c0_6 = arith.constant 0 : index
    %6 = vector.load %arg5[%c0_5, %c0_6] : memref<64x512xf32, #tpu.memory_space<vmem>>, vector<64x512xf32>
    tpu.vector_store %arg5[%c0_5, %c0_6], %5 {strides = array<i32>} : memref<64x512xf32, #tpu.memory_space<vmem>>, vector<64x512xf32>,
    %c0_7 = arith.constant 0 : index
    %c0_8 = arith.constant 0 : index
    %7 = vector.load %arg2[%c0_7, %c0_8] : memref<128x512xf32, #tpu.memory_space<vmem>>, vector<128x512xf32>
    %cst_9 = arith.constant 0.000000e+00 : f32
    %8 = vector.broadcast %cst_9 : f32 to vector<8x128xf32>
    %cst_10 = arith.constant 0.000000e+00 : f32
    %9 = vector.broadcast %cst_10 : f32 to vector<8x128xf32>
    %c0_i32 = arith.constant 0 : i32
    %c8_i32 = arith.constant 8 : i32
    %10 = arith.muli %c0_i32, %c8_i32 : i32
    %11 = tpu.assume_multiple %10, 8 : i32
    %12 = arith.index_cast %11 : i32 to index
    %c0_11 = arith.constant 0 : index
    %13 = vector.load %arg5[%12, %c0_11] : memref<64x512xf32, #tpu.memory_space<vmem>>, vector<8x512xf32>
    %cst_12 = arith.constant dense<0.000000e+00> : vector<8x512xf32>
    %14 = tpu.matmul %8, %7, %cst_12 {dimension_numbers = #tpu.dot_dimension_numbers<[1], [0], [0], [1], [0, 0, 1, 1], [], []>} : vector<8x128xf32>, vector<128x512xf32>, vector<8x512xf32> -> vector<8x512xf32>
    %15 = arith.addf %13, %14 : vector<8x512xf32>
    %16 = vector.extract_strided_slice %15 {offsets = [0, 0], sizes = [8, 128], strides = [1, 1]} : vector<8x512xf32> to vector<8x128xf32>
    %17 = arith.negf %16 : vector<8x128xf32>
    %18 = math.exp %17 : vector<8x128xf32>
    %cst_13 = arith.constant 1.000000e+00 : f32
    %19 = vector.broadcast %cst_13 : f32 to vector<8x128xf32>
    %20 = arith.addf %19, %18 : vector<8x128xf32>
    %21 = arith.divf %19, %20 : vector<8x128xf32>
    %22 = vector.extract_strided_slice %15 {offsets = [0, 128], sizes = [8, 128], strides = [1, 1]} : vector<8x512xf32> to vector<8x128xf32>
    %23 = arith.negf %22 : vector<8x128xf32>
    %24 = math.exp %23 : vector<8x128xf32>
    %cst_14 = arith.constant 1.000000e+00 : f32
    %25 = vector.broadcast %cst_14 : f32 to vector<8x128xf32>
    %26 = arith.addf %25, %24 : vector<8x128xf32>
    %27 = arith.divf %25, %26 : vector<8x128xf32>
    %28 = vector.extract_strided_slice %15 {offsets = [0, 256], sizes = [8, 128], strides = [1, 1]} : vector<8x512xf32> to vector<8x128xf32>
    %29 = math.tanh %28 : vector<8x128xf32>
    %30 = vector.extract_strided_slice %15 {offsets = [0, 384], sizes = [8, 128], strides = [1, 1]} : vector<8x512xf32> to vector<8x128xf32>
    %31 = arith.negf %30 : vector<8x128xf32>
    %32 = math.exp %31 : vector<8x128xf32>
    %cst_15 = arith.constant 1.000000e+00 : f32
    %33 = vector.broadcast %cst_15 : f32 to vector<8x128xf32>
    %34 = arith.addf %33, %32 : vector<8x128xf32>
    %35 = arith.divf %33, %34 : vector<8x128xf32>
    %36 = arith.mulf %27, %9 : vector<8x128xf32>
    %37 = arith.mulf %21, %29 : vector<8x128xf32>
    %38 = arith.addf %36, %37 : vector<8x128xf32>
    %39 = math.tanh %38 : vector<8x128xf32>
    %40 = arith.mulf %35, %39 : vector<8x128xf32>
    %c1_i32 = arith.constant 1 : i32
    %c8_i32_16 = arith.constant 8 : i32
    %41 = arith.muli %c1_i32, %c8_i32_16 : i32
    %42 = tpu.assume_multiple %41, 8 : i32
    %43 = arith.index_cast %42 : i32 to index
    %c0_17 = arith.constant 0 : index
    %44 = vector.load %arg5[%43, %c0_17] : memref<64x512xf32, #tpu.memory_space<vmem>>, vector<8x512xf32>
    %cst_18 = arith.constant dense<0.000000e+00> : vector<8x512xf32>
    %45 = tpu.matmul %40, %7, %cst_18 {dimension_numbers = #tpu.dot_dimension_numbers<[1], [0], [0], [1], [0, 0, 1, 1], [], []>} : vector<8x128xf32>, vector<128x512xf32>, vector<8x512xf32> -> vector<8x512xf32>
    %46 = arith.addf %44, %45 : vector<8x512xf32>
    %47 = vector.extract_strided_slice %46 {offsets = [0, 0], sizes = [8, 128], strides = [1, 1]} : vector<8x512xf32> to vector<8x128xf32>
    %48 = arith.negf %47 : vector<8x128xf32>
    %49 = math.exp %48 : vector<8x128xf32>
    %cst_19 = arith.constant 1.000000e+00 : f32
    %50 = vector.broadcast %cst_19 : f32 to vector<8x128xf32>
    %51 = arith.addf %50, %49 : vector<8x128xf32>
    %52 = arith.divf %50, %51 : vector<8x128xf32>
    %53 = vector.extract_strided_slice %46 {offsets = [0, 128], sizes = [8, 128], strides = [1, 1]} : vector<8x512xf32> to vector<8x128xf32>
    %54 = arith.negf %53 : vector<8x128xf32>
    %55 = math.exp %54 : vector<8x128xf32>
    %cst_20 = arith.constant 1.000000e+00 : f32
    %56 = vector.broadcast %cst_20 : f32 to vector<8x128xf32>
    %57 = arith.addf %56, %55 : vector<8x128xf32>
    %58 = arith.divf %56, %57 : vector<8x128xf32>
    %59 = vector.extract_strided_slice %46 {offsets = [0, 256], sizes = [8, 128], strides = [1, 1]} : vector<8x512xf32> to vector<8x128xf32>
    %60 = math.tanh %59 : vector<8x128xf32>
    %61 = vector.extract_strided_slice %46 {offsets = [0, 384], sizes = [8, 128], strides = [1, 1]} : vector<8x512xf32> to vector<8x128xf32>
    %62 = arith.negf %61 : vector<8x128xf32>
    %63 = math.exp %62 : vector<8x128xf32>
    %cst_21 = arith.constant 1.000000e+00 : f32
    %64 = vector.broadcast %cst_21 : f32 to vector<8x128xf32>
    %65 = arith.addf %64, %63 : vector<8x128xf32>
    %66 = arith.divf %64, %65 : vector<8x128xf32>
    %67 = arith.mulf %58, %38 : vector<8x128xf32>
    %68 = arith.mulf %52, %60 : vector<8x128xf32>
    %69 = arith.addf %67, %68 : vector<8x128xf32>
    %70 = math.tanh %69 : vector<8x128xf32>
    %71 = arith.mulf %66, %70 : vector<8x128xf32>
    %c2_i32 = arith.constant 2 : i32
    %c8_i32_22 = arith.constant 8 : i32
    %72 = arith.muli %c2_i32, %c8_i32_22 : i32
    %73 = tpu.assume_multiple %72, 8 : i32
    %74 = arith.index_cast %73 : i32 to index
    %c0_23 = arith.constant 0 : index
    %75 = vector.load %arg5[%74, %c0_23] : memref<64x512xf32, #tpu.memory_space<vmem>>, vector<8x512xf32>
    %cst_24 = arith.constant dense<0.000000e+00> : vector<8x512xf32>
    %76 = tpu.matmul %71, %7, %cst_24 {dimension_numbers = #tpu.dot_dimension_numbers<[1], [0], [0], [1], [0, 0, 1, 1], [], []>} : vector<8x128xf32>, vector<128x512xf32>, vector<8x512xf32> -> vector<8x512xf32>
    %77 = arith.addf %75, %76 : vector<8x512xf32>
    %78 = vector.extract_strided_slice %77 {offsets = [0, 0], sizes = [8, 128], strides = [1, 1]} : vector<8x512xf32> to vector<8x128xf32>
    %79 = arith.negf %78 : vector<8x128xf32>
    %80 = math.exp %79 : vector<8x128xf32>
    %cst_25 = arith.constant 1.000000e+00 : f32
    %81 = vector.broadcast %cst_25 : f32 to vector<8x128xf32>
    %82 = arith.addf %81, %80 : vector<8x128xf32>
    %83 = arith.divf %81, %82 : vector<8x128xf32>
    %84 = vector.extract_strided_slice %77 {offsets = [0, 128], sizes = [8, 128], strides = [1, 1]} : vector<8x512xf32> to vector<8x128xf32>
    %85 = arith.negf %84 : vector<8x128xf32>
    %86 = math.exp %85 : vector<8x128xf32>
    %cst_26 = arith.constant 1.000000e+00 : f32
    %87 = vector.broadcast %cst_26 : f32 to vector<8x128xf32>
    %88 = arith.addf %87, %86 : vector<8x128xf32>
    %89 = arith.divf %87, %88 : vector<8x128xf32>
    %90 = vector.extract_strided_slice %77 {offsets = [0, 256], sizes = [8, 128], strides = [1, 1]} : vector<8x512xf32> to vector<8x128xf32>
    %91 = math.tanh %90 : vector<8x128xf32>
    %92 = vector.extract_strided_slice %77 {offsets = [0, 384], sizes = [8, 128], strides = [1, 1]} : vector<8x512xf32> to vector<8x128xf32>
    %93 = arith.negf %92 : vector<8x128xf32>
    %94 = math.exp %93 : vector<8x128xf32>
    %cst_27 = arith.constant 1.000000e+00 : f32
    %95 = vector.broadcast %cst_27 : f32 to vector<8x128xf32>
    %96 = arith.addf %95, %94 : vector<8x128xf32>
    %97 = arith.divf %95, %96 : vector<8x128xf32>
    %98 = arith.mulf %89, %69 : vector<8x128xf32>
    %99 = arith.mulf %83, %91 : vector<8x128xf32>
    %100 = arith.addf %98, %99 : vector<8x128xf32>
    %101 = math.tanh %100 : vector<8x128xf32>
    %102 = arith.mulf %97, %101 : vector<8x128xf32>
    %c3_i32 = arith.constant 3 : i32
    %c8_i32_28 = arith.constant 8 : i32
    %103 = arith.muli %c3_i32, %c8_i32_28 : i32
    %104 = tpu.assume_multiple %103, 8 : i32
    %105 = arith.index_cast %104 : i32 to index
    %c0_29 = arith.constant 0 : index
    %106 = vector.load %arg5[%105, %c0_29] : memref<64x512xf32, #tpu.memory_space<vmem>>, vector<8x512xf32>
    %cst_30 = arith.constant dense<0.000000e+00> : vector<8x512xf32>
    %107 = tpu.matmul %102, %7, %cst_30 {dimension_numbers = #tpu.dot_dimension_numbers<[1], [0], [0], [1], [0, 0, 1, 1], [], []>} : vector<8x128xf32>, vector<128x512xf32>, vector<8x512xf32> -> vector<8x512xf32>
    %108 = arith.addf %106, %107 : vector<8x512xf32>
    %109 = vector.extract_strided_slice %108 {offsets = [0, 0], sizes = [8, 128], strides = [1, 1]} : vector<8x512xf32> to vector<8x128xf32>
    %110 = arith.negf %109 : vector<8x128xf32>
    %111 = math.exp %110 : vector<8x128xf32>
    %cst_31 = arith.constant 1.000000e+00 : f32
    %112 = vector.broadcast %cst_31 : f32 to vector<8x128xf32>
    %113 = arith.addf %112, %111 : vector<8x128xf32>
    %114 = arith.divf %112, %113 : vector<8x128xf32>
    %115 = vector.extract_strided_slice %108 {offsets = [0, 128], sizes = [8, 128], strides = [1, 1]} : vector<8x512xf32> to vector<8x128xf32>
    %116 = arith.negf %115 : vector<8x128xf32>
    %117 = math.exp %116 : vector<8x128xf32>
    %cst_32 = arith.constant 1.000000e+00 : f32
    %118 = vector.broadcast %cst_32 : f32 to vector<8x128xf32>
    %119 = arith.addf %118, %117 : vector<8x128xf32>
    %120 = arith.divf %118, %119 : vector<8x128xf32>
    %121 = vector.extract_strided_slice %108 {offsets = [0, 256], sizes = [8, 128], strides = [1, 1]} : vector<8x512xf32> to vector<8x128xf32>
    %122 = math.tanh %121 : vector<8x128xf32>
    %123 = vector.extract_strided_slice %108 {offsets = [0, 384], sizes = [8, 128], strides = [1, 1]} : vector<8x512xf32> to vector<8x128xf32>
    %124 = arith.negf %123 : vector<8x128xf32>
    %125 = math.exp %124 : vector<8x128xf32>
    %cst_33 = arith.constant 1.000000e+00 : f32
    %126 = vector.broadcast %cst_33 : f32 to vector<8x128xf32>
    %127 = arith.addf %126, %125 : vector<8x128xf32>
    %128 = arith.divf %126, %127 : vector<8x128xf32>
    %129 = arith.mulf %120, %100 : vector<8x128xf32>
    %130 = arith.mulf %114, %122 : vector<8x128xf32>
    %131 = arith.addf %129, %130 : vector<8x128xf32>
    %132 = math.tanh %131 : vector<8x128xf32>
    %133 = arith.mulf %128, %132 : vector<8x128xf32>
    %c4_i32 = arith.constant 4 : i32
    %c8_i32_34 = arith.constant 8 : i32
    %134 = arith.muli %c4_i32, %c8_i32_34 : i32
    %135 = tpu.assume_multiple %134, 8 : i32
    %136 = arith.index_cast %135 : i32 to index
    %c0_35 = arith.constant 0 : index
    %137 = vector.load %arg5[%136, %c0_35] : memref<64x512xf32, #tpu.memory_space<vmem>>, vector<8x512xf32>
    %cst_36 = arith.constant dense<0.000000e+00> : vector<8x512xf32>
    %138 = tpu.matmul %133, %7, %cst_36 {dimension_numbers = #tpu.dot_dimension_numbers<[1], [0], [0], [1], [0, 0, 1, 1], [], []>} : vector<8x128xf32>, vector<128x512xf32>, vector<8x512xf32> -> vector<8x512xf32>
    %139 = arith.addf %137, %138 : vector<8x512xf32>
    %140 = vector.extract_strided_slice %139 {offsets = [0, 0], sizes = [8, 128], strides = [1, 1]} : vector<8x512xf32> to vector<8x128xf32>
    %141 = arith.negf %140 : vector<8x128xf32>
    %142 = math.exp %141 : vector<8x128xf32>
    %cst_37 = arith.constant 1.000000e+00 : f32
    %143 = vector.broadcast %cst_37 : f32 to vector<8x128xf32>
    %144 = arith.addf %143, %142 : vector<8x128xf32>
    %145 = arith.divf %143, %144 : vector<8x128xf32>
    %146 = vector.extract_strided_slice %139 {offsets = [0, 128], sizes = [8, 128], strides = [1, 1]} : vector<8x512xf32> to vector<8x128xf32>
    %147 = arith.negf %146 : vector<8x128xf32>
    %148 = math.exp %147 : vector<8x128xf32>
    %cst_38 = arith.constant 1.000000e+00 : f32
    %149 = vector.broadcast %cst_38 : f32 to vector<8x128xf32>
    %150 = arith.addf %149, %148 : vector<8x128xf32>
    %151 = arith.divf %149, %150 : vector<8x128xf32>
    %152 = vector.extract_strided_slice %139 {offsets = [0, 256], sizes = [8, 128], strides = [1, 1]} : vector<8x512xf32> to vector<8x128xf32>
    %153 = math.tanh %152 : vector<8x128xf32>
    %154 = vector.extract_strided_slice %139 {offsets = [0, 384], sizes = [8, 128], strides = [1, 1]} : vector<8x512xf32> to vector<8x128xf32>
    %155 = arith.negf %154 : vector<8x128xf32>
    %156 = math.exp %155 : vector<8x128xf32>
    %cst_39 = arith.constant 1.000000e+00 : f32
    %157 = vector.broadcast %cst_39 : f32 to vector<8x128xf32>
    %158 = arith.addf %157, %156 : vector<8x128xf32>
    %159 = arith.divf %157, %158 : vector<8x128xf32>
    %160 = arith.mulf %151, %131 : vector<8x128xf32>
    %161 = arith.mulf %145, %153 : vector<8x128xf32>
    %162 = arith.addf %160, %161 : vector<8x128xf32>
    %163 = math.tanh %162 : vector<8x128xf32>
    %164 = arith.mulf %159, %163 : vector<8x128xf32>
    %c5_i32 = arith.constant 5 : i32
    %c8_i32_40 = arith.constant 8 : i32
    %165 = arith.muli %c5_i32, %c8_i32_40 : i32
    %166 = tpu.assume_multiple %165, 8 : i32
    %167 = arith.index_cast %166 : i32 to index
    %c0_41 = arith.constant 0 : index
    %168 = vector.load %arg5[%167, %c0_41] : memref<64x512xf32, #tpu.memory_space<vmem>>, vector<8x512xf32>
    %cst_42 = arith.constant dense<0.000000e+00> : vector<8x512xf32>
    %169 = tpu.matmul %164, %7, %cst_42 {dimension_numbers = #tpu.dot_dimension_numbers<[1], [0], [0], [1], [0, 0, 1, 1], [], []>} : vector<8x128xf32>, vector<128x512xf32>, vector<8x512xf32> -> vector<8x512xf32>
    %170 = arith.addf %168, %169 : vector<8x512xf32>
    %171 = vector.extract_strided_slice %170 {offsets = [0, 0], sizes = [8, 128], strides = [1, 1]} : vector<8x512xf32> to vector<8x128xf32>
    %172 = arith.negf %171 : vector<8x128xf32>
    %173 = math.exp %172 : vector<8x128xf32>
    %cst_43 = arith.constant 1.000000e+00 : f32
    %174 = vector.broadcast %cst_43 : f32 to vector<8x128xf32>
    %175 = arith.addf %174, %173 : vector<8x128xf32>
    %176 = arith.divf %174, %175 : vector<8x128xf32>
    %177 = vector.extract_strided_slice %170 {offsets = [0, 128], sizes = [8, 128], strides = [1, 1]} : vector<8x512xf32> to vector<8x128xf32>
    %178 = arith.negf %177 : vector<8x128xf32>
    %179 = math.exp %178 : vector<8x128xf32>
    %cst_44 = arith.constant 1.000000e+00 : f32
    %180 = vector.broadcast %cst_44 : f32 to vector<8x128xf32>
    %181 = arith.addf %180, %179 : vector<8x128xf32>
    %182 = arith.divf %180, %181 : vector<8x128xf32>
    %183 = vector.extract_strided_slice %170 {offsets = [0, 256], sizes = [8, 128], strides = [1, 1]} : vector<8x512xf32> to vector<8x128xf32>
    %184 = math.tanh %183 : vector<8x128xf32>
    %185 = vector.extract_strided_slice %170 {offsets = [0, 384], sizes = [8, 128], strides = [1, 1]} : vector<8x512xf32> to vector<8x128xf32>
    %186 = arith.negf %185 : vector<8x128xf32>
    %187 = math.exp %186 : vector<8x128xf32>
    %cst_45 = arith.constant 1.000000e+00 : f32
    %188 = vector.broadcast %cst_45 : f32 to vector<8x128xf32>
    %189 = arith.addf %188, %187 : vector<8x128xf32>
    %190 = arith.divf %188, %189 : vector<8x128xf32>
    %191 = arith.mulf %182, %162 : vector<8x128xf32>
    %192 = arith.mulf %176, %184 : vector<8x128xf32>
    %193 = arith.addf %191, %192 : vector<8x128xf32>
    %194 = math.tanh %193 : vector<8x128xf32>
    %195 = arith.mulf %190, %194 : vector<8x128xf32>
    %c6_i32 = arith.constant 6 : i32
    %c8_i32_46 = arith.constant 8 : i32
    %196 = arith.muli %c6_i32, %c8_i32_46 : i32
    %197 = tpu.assume_multiple %196, 8 : i32
    %198 = arith.index_cast %197 : i32 to index
    %c0_47 = arith.constant 0 : index
    %199 = vector.load %arg5[%198, %c0_47] : memref<64x512xf32, #tpu.memory_space<vmem>>, vector<8x512xf32>
    %cst_48 = arith.constant dense<0.000000e+00> : vector<8x512xf32>
    %200 = tpu.matmul %195, %7, %cst_48 {dimension_numbers = #tpu.dot_dimension_numbers<[1], [0], [0], [1], [0, 0, 1, 1], [], []>} : vector<8x128xf32>, vector<128x512xf32>, vector<8x512xf32> -> vector<8x512xf32>
    %201 = arith.addf %199, %200 : vector<8x512xf32>
    %202 = vector.extract_strided_slice %201 {offsets = [0, 0], sizes = [8, 128], strides = [1, 1]} : vector<8x512xf32> to vector<8x128xf32>
    %203 = arith.negf %202 : vector<8x128xf32>
    %204 = math.exp %203 : vector<8x128xf32>
    %cst_49 = arith.constant 1.000000e+00 : f32
    %205 = vector.broadcast %cst_49 : f32 to vector<8x128xf32>
    %206 = arith.addf %205, %204 : vector<8x128xf32>
    %207 = arith.divf %205, %206 : vector<8x128xf32>
    %208 = vector.extract_strided_slice %201 {offsets = [0, 128], sizes = [8, 128], strides = [1, 1]} : vector<8x512xf32> to vector<8x128xf32>
    %209 = arith.negf %208 : vector<8x128xf32>
    %210 = math.exp %209 : vector<8x128xf32>
    %cst_50 = arith.constant 1.000000e+00 : f32
    %211 = vector.broadcast %cst_50 : f32 to vector<8x128xf32>
    %212 = arith.addf %211, %210 : vector<8x128xf32>
    %213 = arith.divf %211, %212 : vector<8x128xf32>
    %214 = vector.extract_strided_slice %201 {offsets = [0, 256], sizes = [8, 128], strides = [1, 1]} : vector<8x512xf32> to vector<8x128xf32>
    %215 = math.tanh %214 : vector<8x128xf32>
    %216 = vector.extract_strided_slice %201 {offsets = [0, 384], sizes = [8, 128], strides = [1, 1]} : vector<8x512xf32> to vector<8x128xf32>
    %217 = arith.negf %216 : vector<8x128xf32>
    %218 = math.exp %217 : vector<8x128xf32>
    %cst_51 = arith.constant 1.000000e+00 : f32
    %219 = vector.broadcast %cst_51 : f32 to vector<8x128xf32>
    %220 = arith.addf %219, %218 : vector<8x128xf32>
    %221 = arith.divf %219, %220 : vector<8x128xf32>
    %222 = arith.mulf %213, %193 : vector<8x128xf32>
    %223 = arith.mulf %207, %215 : vector<8x128xf32>
    %224 = arith.addf %222, %223 : vector<8x128xf32>
    %225 = math.tanh %224 : vector<8x128xf32>
    %226 = arith.mulf %221, %225 : vector<8x128xf32>
    %c7_i32 = arith.constant 7 : i32
    %c8_i32_52 = arith.constant 8 : i32
    %227 = arith.muli %c7_i32, %c8_i32_52 : i32
    %228 = tpu.assume_multiple %227, 8 : i32
    %229 = arith.index_cast %228 : i32 to index
    %c0_53 = arith.constant 0 : index
    %230 = vector.load %arg5[%229, %c0_53] : memref<64x512xf32, #tpu.memory_space<vmem>>, vector<8x512xf32>
    %cst_54 = arith.constant dense<0.000000e+00> : vector<8x512xf32>
    %231 = tpu.matmul %226, %7, %cst_54 {dimension_numbers = #tpu.dot_dimension_numbers<[1], [0], [0], [1], [0, 0, 1, 1], [], []>} : vector<8x128xf32>, vector<128x512xf32>, vector<8x512xf32> -> vector<8x512xf32>
    %232 = arith.addf %230, %231 : vector<8x512xf32>
    %233 = vector.extract_strided_slice %232 {offsets = [0, 0], sizes = [8, 128], strides = [1, 1]} : vector<8x512xf32> to vector<8x128xf32>
    %234 = arith.negf %233 : vector<8x128xf32>
    %235 = math.exp %234 : vector<8x128xf32>
    %cst_55 = arith.constant 1.000000e+00 : f32
    %236 = vector.broadcast %cst_55 : f32 to vector<8x128xf32>
    %237 = arith.addf %236, %235 : vector<8x128xf32>
    %238 = arith.divf %236, %237 : vector<8x128xf32>
    %239 = vector.extract_strided_slice %232 {offsets = [0, 128], sizes = [8, 128], strides = [1, 1]} : vector<8x512xf32> to vector<8x128xf32>
    %240 = arith.negf %239 : vector<8x128xf32>
    %241 = math.exp %240 : vector<8x128xf32>
    %cst_56 = arith.constant 1.000000e+00 : f32
    %242 = vector.broadcast %cst_56 : f32 to vector<8x128xf32>
    %243 = arith.addf %242, %241 : vector<8x128xf32>
    %244 = arith.divf %242, %243 : vector<8x128xf32>
    %245 = vector.extract_strided_slice %232 {offsets = [0, 256], sizes = [8, 128], strides = [1, 1]} : vector<8x512xf32> to vector<8x128xf32>
    %246 = math.tanh %245 : vector<8x128xf32>
    %247 = vector.extract_strided_slice %232 {offsets = [0, 384], sizes = [8, 128], strides = [1, 1]} : vector<8x512xf32> to vector<8x128xf32>
    %248 = arith.negf %247 : vector<8x128xf32>
    %249 = math.exp %248 : vector<8x128xf32>
    %cst_57 = arith.constant 1.000000e+00 : f32
    %250 = vector.broadcast %cst_57 : f32 to vector<8x128xf32>
    %251 = arith.addf %250, %249 : vector<8x128xf32>
    %252 = arith.divf %250, %251 : vector<8x128xf32>
    %253 = arith.mulf %244, %224 : vector<8x128xf32>
    %254 = arith.mulf %238, %246 : vector<8x128xf32>
    %255 = arith.addf %253, %254 : vector<8x128xf32>
    %256 = math.tanh %255 : vector<8x128xf32>
    %257 = arith.mulf %252, %256 : vector<8x128xf32>
    %c8_i32_58 = arith.constant 8 : i32
    %c0_59 = arith.constant 0 : index
    %c0_60 = arith.constant 0 : index
    %258 = vector.load %arg4[%c0_59, %c0_60] : memref<8x128xf32, #tpu.memory_space<vmem>>, vector<8x128xf32>
    tpu.vector_store %arg4[%c0_59, %c0_60], %257 {strides = array<i32>} : memref<8x128xf32, #tpu.memory_space<vmem>>, vector<8x128xf32>,
    return
  }
}

</mosaic_0001>

<bundles_post_ra>
// kernel: tpu_custom_call.1
= control target key start
LH: loop header
LB: loop body
LE: loop exit
PB: predicated region body
PF: predicated region fallthrough
CT: control target
= control target key end

     0   :  { %9 = vsyncpa [#allocation4], 0  ;;  %s3191_s0 = inlined_call_operand.vmem [shape: f32[64,4], index: 0, kind: input, shape index: {}]   ;;  %s3192_s1 = inlined_call_operand.vmem [shape: f32[4,512], index: 1, kind: input, shape index: {}]   ;;  %s3193_s2 = inlined_call_operand.hbm [shape: f32[128,512], index: 2, kind: input, shape index: {}]   ;;  %s3194_s3 = inlined_call_operand.vmem [shape: f32[1,512], index: 3, kind: input, shape index: {}]   ;;  %s3195_s4 = inlined_call_operand.hbm [shape: f32[8,128], index: 4, kind: output, shape index: {}]  }
   0x1   :  { %10 = vsyncpa [#allocation5], 0  ;;  %s2666_s15 = smov [#allocation3]   ;;  %s2618_s19 = scalar_lea.hbm %s3193_s2, 8192 }
   0x2   :  { %s20_s16 = sshll.u32 %s2666_s15, 4  ;;  %p2619_p0 = scmp.ne.s32.totalorder %s3193_s2, %s2618_s19  ;;  %s21_s16 = int_to_ptr.vmem [resolvable:$true] %s20_s16 }
   0x3   :  { %p2622_p1 = scmp.lt.u32.totalorder %s2618_s19, %s3193_s2 }
   0x5   :  { %p2624_p2 = pnand %p2622_p1, %p2619_p0 }
   0x7   :  { %2627 = shalt.err (!%p2624_p2)
}
   0x8   :  { %s2628_s24 = scalar_lea.vmem %s21_s16, 8192  ;;  %p2633_p4 = scmp.lt.s32.totalorder %s21_s16, %s21_s16 }
   0x9   :  { %p2629_p3 = scmp.ne.s32.totalorder %s21_s16, %s2628_s24  ;;  %p2634_p5 = scmp.lt.s32.totalorder %s2628_s24, %s2628_s24 }
   0xb   :  { %p2635_p6 = por %p2634_p5, %p2633_p4 }
   0xd   :  { %p2636_p7 = pnand %p2635_p6, %p2629_p3 }
   0xf   :  { %2639 = shalt.err (!%p2636_p7)
}
  0x10   :  { %s2667_s25 = smov 512   ;;  %s2668_s26 = smov 32  }
  0x11   :  { %26 = dma.hbm_to_vmem [thread:$0]  %s3193_s2, 8192, %s21_s16, [#allocation4], %s2667_s25, %s2667_s25, %s2668_s26  }
  0x12   :  { %2662 = dma.done.wait [#allocation4], 8192  }
  0x13   :  { %2663 = vsyncadd [#allocation4], 4294959104  ;;  %v2669_v0 = vmov 0.0   ;;  %v40_v1 = vld [vmem:[%s3192_s1] sm:$0xff]  ;;  %vm93_vm0 = vcmask 1043456   ;;  %v41_v2 = vld [vmem:[%s3192_s1 + $0x8] sm:$0xff] }
  0x14   :  { %166 = vmatprep.mubr.f32.mxu0 %v2669_v0  ;;  %279 = vmatprep.mubr.f32.mxu1 %v2669_v0  ;;  %v32_v3 = vld [vmem:[%s3191_s0] sm:$0xff]  ;;  %v66_v4 = vcombine.high %v40_v1, %v40_v1  ;;  %v67_v5 = vcombine.high %v41_v2, %v41_v2  ;;  %v363_v8 = vld [vmem:[#allocation3 + $0x18] sm:$0xff]  ;;  %vm68_vm1 = vcmask 31744   ;;  %v360_v11 = vld [vmem:[#allocation3] sm:$0xff] }
  0x15   :  { %v361_v6 = vld [vmem:[#allocation3 + $0x8] sm:$0xff]  ;;  %v367_v10 = vld [vmem:[#allocation3 + $0x38] sm:$0xff]  ;;  %v364_v12 = vld [vmem:[#allocation3 + $0x20] sm:$0xff] }
  0x16   :  { %v365_v7 = vld [vmem:[#allocation3 + $0x28] sm:$0xff]  ;;  %1863 = vmatprep.subr.msk.mxu0 %vm93_vm0, %v66_v4  ;;  %1873 = vmatprep.subr.msk.mxu1 %vm93_vm0, %v67_v5  ;;  %v2723_v13 = vpack.c.bf16 %v367_v10, %v363_v8  ;;  %v2725_v14 = vpack.c.bf16 %v364_v12, %v360_v11  ;;  %v362_v15 = vld [vmem:[#allocation3 + $0x10] sm:$0xff]  ;;  %v371_v20 = vld [vmem:[#allocation3 + $0x58] sm:$0xff] }
  0x17   :  { %v2719_v9 = vpack.c.bf16 %v365_v7, %v361_v6  ;;  %v366_v16 = vld [vmem:[#allocation3 + $0x30] sm:$0xff]  ;;  %1864 = vmatpush1.msk.msra.mxu0 %vm93_vm0, %v40_v1  ;;  %1874 = vmatpush1.msk.msra.mxu1 %vm93_vm0, %v41_v2  ;;  %v369_v18 = vld [vmem:[#allocation3 + $0x48] sm:$0xff]  ;;  %v375_v21 = vld [vmem:[#allocation3 + $0x78] sm:$0xff] }
  0x18   :  { %v2729_v17 = vpack.c.bf16 %v366_v16, %v362_v15  ;;  %v373_v19 = vld [vmem:[#allocation3 + $0x68] sm:$0xff]  ;;  %1865 = vmatmul.mubr.msk.f32.vlgmr.msra.gmra.mrb[0].mxu0 %vm68_vm1, %v32_v3  ;;  %1875 = vmatmul.mubr.msk.f32.vlgmr.msra.gmra.mrb[0].mxu1 %vm68_vm1, %v32_v3  ;;  %v368_v22 = vld [vmem:[#allocation3 + $0x40] sm:$0xff]  ;;  %v33_v24 = vld [vmem:[%s3191_s0 + $0x8] sm:$0xff]  ;;  %v2740_v26 = vpack.c.bf16 %v375_v21, %v371_v20 }
  0x19   :  { %v372_v23 = vld [vmem:[#allocation3 + $0x60] sm:$0xff]  ;;  %1908 = vmatprep.subr.bf16.mxu0 %v2719_v9  ;;  %1940 = vmatprep.subr.bf16.mxu1 %v2723_v13  ;;  %v2738_v25 = vpack.c.bf16 %v373_v19, %v369_v18  ;;  %v370_v27 = vld [vmem:[#allocation3 + $0x50] sm:$0xff]  ;;  %v377_v31 = vld [vmem:[#allocation3 + $0x88] sm:$0xff] }
  0x1a   :  { %v374_v28 = vld [vmem:[#allocation3 + $0x70] sm:$0xff]  ;;  %1910 = vmatpush1.bf16.msra.mxu0 %v2725_v14  ;;  %1942 = vmatpush1.bf16.msra.mxu1 %v2729_v17  ;;  %v2744_v29 = vpack.c.bf16 %v372_v23, %v368_v22  ;;  %v381_v32 = vld [vmem:[#allocation3 + $0xa8] sm:$0xff]  ;;  %v379_v33 = vld [vmem:[#allocation3 + $0x98] sm:$0xff] }
  0x1b   :  { %v2746_v30 = vpack.c.bf16 %v374_v28, %v370_v27  ;;  %172 = vmatprep.mubr.f32.mxu0 %v2669_v0  ;;  %285 = vmatprep.mubr.f32.mxu1 %v2669_v0  ;;  %v383_v34 = vld [vmem:[#allocation3 + $0xb8] sm:$0xff]  ;;  %v376_v35 = vld [vmem:[#allocation3 + $0x80] sm:$0xff]  ;;  %v378_v37 = vld [vmem:[#allocation3 + $0x90] sm:$0xff]  ;;  %v2757_v40 = vpack.c.bf16 %v381_v32, %v377_v31 }
  0x1c   :  { %v380_v36 = vld [vmem:[#allocation3 + $0xa0] sm:$0xff]  ;;  %1866 = vmatmul.mubr.msk.f32.gmra.mrb[2].mxu0 %vm68_vm1, %v33_v24  ;;  %1876 = vmatmul.mubr.msk.f32.gmra.mrb[2].mxu1 %vm68_vm1, %v33_v24  ;;  %v382_v38 = vld [vmem:[#allocation3 + $0xb0] sm:$0xff]  ;;  %v34_v39 = vld [vmem:[%s3191_s0 + $0x10] sm:$0xff]  ;;  %v2759_v41 = vpack.c.bf16 %v383_v34, %v379_v33 }
  0x1d   :  { %1912 = vmatprep.subr.bf16.mxu0 %v2738_v25  ;;  %1944 = vmatprep.subr.bf16.mxu1 %v2740_v26  ;;  %v385_v42 = vld [vmem:[#allocation3 + $0xc8] sm:$0xff]  ;;  %v2763_v44 = vpack.c.bf16 %v380_v36, %v376_v35  ;;  %v2765_v45 = vpack.c.bf16 %v382_v38, %v378_v37  ;;  %v387_v46 = vld [vmem:[#allocation3 + $0xd8] sm:$0xff]  ;;  %v384_v48 = vld [vmem:[#allocation3 + $0xc0] sm:$0xff] }
  0x1e   :  { %v389_v43 = vld [vmem:[#allocation3 + $0xe8] sm:$0xff]  ;;  %1914 = vmatpush1.bf16.msra.mxu0 %v2744_v29  ;;  %1946 = vmatpush1.bf16.msra.mxu1 %v2746_v30  ;;  %v391_v47 = vld [vmem:[#allocation3 + $0xf8] sm:$0xff]  ;;  %v388_v49 = vld [vmem:[#allocation3 + $0xe0] sm:$0xff] }
  0x1f   :  { %178 = vmatprep.mubr.f32.mxu0 %v2669_v0  ;;  %291 = vmatprep.mubr.f32.mxu1 %v2669_v0  ;;  %v386_v50 = vld [vmem:[#allocation3 + $0xd0] sm:$0xff]  ;;  %v35_v52 = vld [vmem:[%s3191_s0 + $0x18] sm:$0xff]  ;;  %v2776_v53 = vpack.c.bf16 %v389_v43, %v385_v42  ;;  %v2778_v54 = vpack.c.bf16 %v391_v47, %v387_v46  ;;  %v393_v55 = vld [vmem:[#allocation3 + $0x108] sm:$0xff]  ;;  %v2782_v57 = vpack.c.bf16 %v388_v49, %v384_v48 }
  0x20   :  { %v390_v51 = vld [vmem:[#allocation3 + $0xf0] sm:$0xff]  ;;  %1867 = vmatmul.mubr.msk.f32.gmra.mrb[4].mxu0 %vm68_vm1, %v34_v39  ;;  %1877 = vmatmul.mubr.msk.f32.gmra.mrb[4].mxu1 %vm68_vm1, %v34_v39  ;;  %v397_v56 = vld [vmem:[#allocation3 + $0x128] sm:$0xff]  ;;  %v395_v59 = vld [vmem:[#allocation3 + $0x118] sm:$0xff] }
  0x21   :  { %1916 = vmatprep.subr.bf16.mxu0 %v2757_v40  ;;  %1948 = vmatprep.subr.bf16.mxu1 %v2759_v41  ;;  %v2784_v58 = vpack.c.bf16 %v390_v51, %v386_v50  ;;  %v399_v60 = vld [vmem:[#allocation3 + $0x138] sm:$0xff]  ;;  %v392_v61 = vld [vmem:[#allocation3 + $0x100] sm:$0xff]  ;;  %v394_v63 = vld [vmem:[#allocation3 + $0x110] sm:$0xff]  ;;  %v2795_v3 = vpack.c.bf16 %v397_v56, %v393_v55 }
  0x22   :  { %1918 = vmatpush1.bf16.msra.mxu0 %v2763_v44  ;;  %1950 = vmatpush1.bf16.msra.mxu1 %v2765_v45  ;;  %v396_v62 = vld [vmem:[#allocation3 + $0x120] sm:$0xff]  ;;  %v398_v1 = vld [vmem:[#allocation3 + $0x130] sm:$0xff]  ;;  %v36_v2 = vld [vmem:[%s3191_s0 + $0x20] sm:$0xff]  ;;  %v2797_v4 = vpack.c.bf16 %v399_v60, %v395_v59 }
  0x23   :  { %184 = vmatprep.mubr.f32.mxu0 %v2669_v0  ;;  %297 = vmatprep.mubr.f32.mxu1 %v2669_v0  ;;  %v401_v5 = vld [vmem:[#allocation3 + $0x148] sm:$0xff]  ;;  %v2801_v7 = vpack.c.bf16 %v396_v62, %v392_v61  ;;  %v2803_v8 = vpack.c.bf16 %v398_v1, %v394_v63  ;;  %v403_v10 = vld [vmem:[#allocation3 + $0x158] sm:$0xff]  ;;  %v400_v12 = vld [vmem:[#allocation3 + $0x140] sm:$0xff]  ;;  %v44_v62 = vlaneseq }
  0x24   :  { %1868 = vmatmul.mubr.msk.f32.gmra.mrb[6].mxu0 %vm68_vm1, %v35_v52  ;;  %1878 = vmatmul.mubr.msk.f32.gmra.mrb[6].mxu1 %vm68_vm1, %v35_v52  ;;  %v405_v6 = vld [vmem:[#allocation3 + $0x168] sm:$0xff]  ;;  %v407_v11 = vld [vmem:[#allocation3 + $0x178] sm:$0xff]  ;;  %v404_v15 = vld [vmem:[#allocation3 + $0x160] sm:$0xff] }
  0x25   :  { %1920 = vmatprep.subr.bf16.mxu0 %v2776_v53  ;;  %1952 = vmatprep.subr.bf16.mxu1 %v2778_v54  ;;  %v402_v16 = vld [vmem:[#allocation3 + $0x150] sm:$0xff]  ;;  %v2814_v20 = vpack.c.bf16 %v405_v6, %v401_v5  ;;  %v2816_v21 = vpack.c.bf16 %v407_v11, %v403_v10  ;;  %v409_v22 = vld [vmem:[#allocation3 + $0x188] sm:$0xff]  ;;  %v2820_v24 = vpack.c.bf16 %v404_v15, %v400_v12  ;;  %v411_v28 = vld [vmem:[#allocation3 + $0x198] sm:$0xff]  ;;  %v45_v63 = vshrl.u32 %v44_v62, 7 }
  0x26   :  { %1922 = vmatpush1.bf16.msra.mxu0 %v2782_v57  ;;  %1954 = vmatpush1.bf16.msra.mxu1 %v2784_v58  ;;  %v406_v18 = vld [vmem:[#allocation3 + $0x170] sm:$0xff]  ;;  %v413_v23 = vld [vmem:[#allocation3 + $0x1a8] sm:$0xff]  ;;  %v415_v31 = vld [vmem:[#allocation3 + $0x1b8] sm:$0xff] }
  0x27   :  { %190 = vmatprep.mubr.f32.mxu0 %v2669_v0  ;;  %303 = vmatprep.mubr.f32.mxu1 %v2669_v0  ;;  %v37_v19 = vld [vmem:[%s3191_s0 + $0x28] sm:$0xff]  ;;  %v2822_v27 = vpack.c.bf16 %v406_v18, %v402_v16  ;;  %v408_v32 = vld [vmem:[#allocation3 + $0x180] sm:$0xff]  ;;  %v38_v36 = vld [vmem:[%s3191_s0 + $0x30] sm:$0xff]  ;;  %v2833_v37 = vpack.c.bf16 %v413_v23, %v409_v22  ;;  %v2835_v38 = vpack.c.bf16 %v415_v31, %v411_v28  ;;  %v46_v1 = vsub.s32 0, %v45_v63 }
  0x28   :  { %1869 = vmatmul.mubr.msk.f32.gmra.mrb[8].mxu0 %vm68_vm1, %v36_v2  ;;  %1879 = vmatmul.mubr.msk.f32.gmra.mrb[8].mxu1 %vm68_vm1, %v36_v2  ;;  %v412_v33 = vld [vmem:[#allocation3 + $0x1a0] sm:$0xff]  ;;  %v410_v34 = vld [vmem:[#allocation3 + $0x190] sm:$0xff]  ;;  %v417_v39 = vld [vmem:[#allocation3 + $0x1c8] sm:$0xff]  ;;  %v50_v5 = vsub.s32 1, %v45_v63  ;;  %v58_v15 = vsub.s32 3, %v45_v63 }
  0x29   :  { %1924 = vmatprep.subr.bf16.mxu0 %v2795_v3  ;;  %1956 = vmatprep.subr.bf16.mxu1 %v2797_v4  ;;  %v414_v35 = vld [vmem:[#allocation3 + $0x1b0] sm:$0xff]  ;;  %v421_v42 = vld [vmem:[#allocation3 + $0x1e8] sm:$0xff]  ;;  %v2839_v43 = vpack.c.bf16 %v412_v33, %v408_v32  ;;  %v419_v47 = vld [vmem:[#allocation3 + $0x1d8] sm:$0xff]  ;;  %v54_v32 = vsub.s32 2, %v45_v63 }
  0x2a   :  { %1926 = vmatpush1.bf16.msra.mxu0 %v2801_v7  ;;  %1958 = vmatpush1.bf16.msra.mxu1 %v2803_v8  ;;  %v2841_v46 = vpack.c.bf16 %v414_v35, %v410_v34  ;;  %v423_v48 = vld [vmem:[#allocation3 + $0x1f8] sm:$0xff]  ;;  %v416_v49 = vld [vmem:[#allocation3 + $0x1c0] sm:$0xff]  ;;  %v418_v51 = vld [vmem:[#allocation3 + $0x1d0] sm:$0xff]  ;;  %v2852_v56 = vpack.c.bf16 %v421_v42, %v417_v39 }
  0x2b   :  { %196 = vmatprep.mubr.f32.mxu0 %v2669_v0  ;;  %309 = vmatprep.mubr.f32.mxu1 %v2669_v0  ;;  %v420_v50 = vld [vmem:[#allocation3 + $0x1e0] sm:$0xff]  ;;  %v422_v52 = vld [vmem:[#allocation3 + $0x1f0] sm:$0xff]  ;;  %v2854_v59 = vpack.c.bf16 %v423_v48, %v419_v47  ;;  %v42_v2 = vld [vmem:[%s3194_s3] sm:$0xf]  ;;  %s2670_s3 = smov [#allocation6]  }
  0x2c   :  { %1870 = vmatmul.mubr.msk.f32.gmra.mrb[10].mxu0 %vm68_vm1, %v37_v19  ;;  %1880 = vmatmul.mubr.msk.f32.gmra.mrb[10].mxu1 %vm68_vm1, %v37_v19  ;;  %v39_v55 = vld [vmem:[%s3191_s0 + $0x38] sm:$0xff]  ;;  %v2858_v60 = vpack.c.bf16 %v420_v50, %v416_v49  ;;  %v2860_v61 = vpack.c.bf16 %v422_v52, %v418_v51  ;;  %v2913_v6 = vrot.slane %v42_v2, %v46_v1  ;;  %s1847_s22 = sshll.u32 %s2670_s3, 4  ;;  %s1848_s22 = int_to_ptr.vmem [resolvable:$true] %s1847_s22 }
  0x2d   :  { %1928 = vmatprep.subr.bf16.mxu0 %v2814_v20  ;;  %1960 = vmatprep.subr.bf16.mxu1 %v2816_v21  ;;  %v2915_v10 = vrot.slane %v42_v2, %v50_v5  ;;  %v2919_v31 = vrot.slane %v42_v2, %v58_v15  ;;  %v2922_v34 = vrot.slane %v42_v2, %v54_v32  ;;  %s2640_s23 = scalar_lea.vmem %s1848_s22, 128  ;;  %p2645_p9 = scmp.lt.s32.totalorder %s1848_s22, %s1848_s22 }
  0x2e   :  { %1930 = vmatpush1.bf16.msra.mxu0 %v2820_v24  ;;  %1962 = vmatpush1.bf16.msra.mxu1 %v2822_v27  ;;  %p2641_p8 = scmp.ne.s32.totalorder %s1848_s22, %s2640_s23  ;;  %p2646_p10 = scmp.lt.s32.totalorder %s2640_s23, %s2640_s23 }
  0x2f   :  { %202 = vmatprep.mubr.f32.mxu0 %v2669_v0  ;;  %315 = vmatprep.mubr.f32.mxu1 %v2669_v0 }
  0x30   :  { %1871 = vmatmul.mubr.msk.f32.gmra.mrb[12].mxu0 %vm68_vm1, %v38_v36  ;;  %1881 = vmatmul.mubr.msk.f32.gmra.mrb[12].mxu1 %vm68_vm1, %v38_v36  ;;  %p2647_p11 = por %p2646_p10, %p2645_p9 }
  0x31   :  { %1932 = vmatprep.subr.bf16.mxu0 %v2833_v37  ;;  %1964 = vmatprep.subr.bf16.mxu1 %v2835_v38 }
  0x32   :  { %1934 = vmatpush1.bf16.msra.mxu0 %v2839_v43  ;;  %1966 = vmatpush1.bf16.msra.mxu1 %v2841_v46  ;;  %p2648_p12 = pnand %p2647_p11, %p2641_p8 }
  0x33   :  { %208 = vmatprep.mubr.f32.mxu0 %v2669_v0  ;;  %321 = vmatprep.mubr.f32.mxu1 %v2669_v0 }
  0x34   :  { %1872 = vmatmul.mubr.msk.f32.gmra.mrb[14].mxu0 %vm68_vm1, %v39_v55  ;;  %1882 = vmatmul.mubr.msk.f32.gmra.mrb[14].mxu1 %vm68_vm1, %v39_v55 }
  0x35   :  { %1936 = vmatprep.subr.bf16.mxu0 %v2852_v56  ;;  %1968 = vmatprep.subr.bf16.mxu1 %v2854_v59 }
  0x36   :  { %1938 = vmatpush1.bf16.msra.mxu0 %v2858_v60  ;;  %1970 = vmatpush1.bf16.msra.mxu1 %v2860_v61 }
  0x37   :  { %495 = vmatprep.mubr.f32.mxu0 %v2669_v0  ;;  %566 = vmatprep.mubr.f32.mxu1 %v2669_v0 }
  0x38   :  { %1972 = vmatprep.subr.bf16.mxu0 %v2719_v9  ;;  %2004 = vmatprep.subr.bf16.mxu1 %v2723_v13 }
  0x39   :  { %496 = vmatmul.mubr.f32.vlgmr.msra.gmra.mrb[0].mxu0 %v2669_v0  ;;  %567 = vmatmul.mubr.f32.vlgmr.msra.gmra.mrb[0].mxu1 %v2669_v0 }
  0x3a   :  { %1974 = vmatpush1.bf16.msra.mxu0 %v2725_v14  ;;  %2006 = vmatpush1.bf16.msra.mxu1 %v2729_v17 }
  0x3b   :  { %1976 = vmatprep.subr.bf16.mxu0 %v2738_v25  ;;  %2008 = vmatprep.subr.bf16.mxu1 %v2740_v26 }
  0x3c   :  { %672 = vmatprep.mubr.f32.mxu0 %v2669_v0  ;;  %743 = vmatprep.mubr.f32.mxu1 %v2669_v0 }
  0x3e   :  { %1978 = vmatpush1.bf16.msra.mxu0 %v2744_v29  ;;  %2010 = vmatpush1.bf16.msra.mxu1 %v2746_v30 }
  0x3f   :  { %1980 = vmatprep.subr.bf16.mxu0 %v2757_v40  ;;  %2012 = vmatprep.subr.bf16.mxu1 %v2759_v41 }
  0x42   :  { %1982 = vmatpush1.bf16.msra.mxu0 %v2763_v44  ;;  %2014 = vmatpush1.bf16.msra.mxu1 %v2765_v45 }
  0x43   :  { %1984 = vmatprep.subr.bf16.mxu0 %v2776_v53  ;;  %2016 = vmatprep.subr.bf16.mxu1 %v2778_v54 }
  0x46   :  { %1986 = vmatpush1.bf16.msra.mxu0 %v2782_v57  ;;  %2018 = vmatpush1.bf16.msra.mxu1 %v2784_v58 }
  0x47   :  { %1988 = vmatprep.subr.bf16.mxu0 %v2795_v3  ;;  %2020 = vmatprep.subr.bf16.mxu1 %v2797_v4 }
  0x4a   :  { %1990 = vmatpush1.bf16.msra.mxu0 %v2801_v7  ;;  %2022 = vmatpush1.bf16.msra.mxu1 %v2803_v8 }
  0x4b   :  { %1992 = vmatprep.subr.bf16.mxu0 %v2814_v20  ;;  %2024 = vmatprep.subr.bf16.mxu1 %v2816_v21 }
  0x4e   :  { %1994 = vmatpush1.bf16.msra.mxu0 %v2820_v24  ;;  %2026 = vmatpush1.bf16.msra.mxu1 %v2822_v27 }
  0x4f   :  { %1996 = vmatprep.subr.bf16.mxu0 %v2833_v37  ;;  %2028 = vmatprep.subr.bf16.mxu1 %v2835_v38 }
  0x52   :  { %1998 = vmatpush1.bf16.msra.mxu0 %v2839_v43  ;;  %2030 = vmatpush1.bf16.msra.mxu1 %v2841_v46 }
  0x53   :  { %2000 = vmatprep.subr.bf16.mxu0 %v2852_v56  ;;  %2032 = vmatprep.subr.bf16.mxu1 %v2854_v59 }
  0x56   :  { %2002 = vmatpush1.bf16.msra.mxu0 %v2858_v60  ;;  %2034 = vmatpush1.bf16.msra.mxu1 %v2860_v61 }
  0x57   :  { %2036 = vmatprep.subr.bf16.mxu0 %v2719_v9  ;;  %2068 = vmatprep.subr.bf16.mxu1 %v2723_v13 }
 0x10c   :  { %v497_v11 = vpop.f32.mrb[0].mxu0  ;;  %v568_v12 = vpop.f32.mrb[0].mxu1 }
 0x10d   :  { %v2419_v16 = vadd.f32 %v497_v11, %v2913_v6  ;;  %v499_v18 = vpop.f32.mrb[1].mxu0  ;;  %v570_v19 = vpop.f32.mrb[1].mxu1  ;;  %v2435_v36 = vadd.f32 %v568_v12, %v2922_v34 }
 0x10e   :  { %v2420_v22 = vadd.f32 %v499_v18, %v2915_v10  ;;  %v2436_v33 = vadd.f32 %v570_v19, %v2919_v31 }
 0x10f   :  { %v1883_v23 = vmul.f32 -1.442695, %v2419_v16 }
 0x110   :  { %v1884_v28 = vmul.f32 -1.442695, %v2420_v22  ;;  %v1885_v35 = vmul.f32 -1.442695, %v2436_v33 }
 0x111   :  { %2490 = vpow2.f32 %v1883_v23 }
 0x112   :  { %2492 = vpow2.f32 %v1884_v28 }
 0x113   :  { %2494 = vpow2.f32 %v1885_v35 }
 0x114   :  { %2496 = vtanh.f32 %v2435_v36 }
 0x11b   :  { %v2491_v39 = vpop.eup %2490 }
 0x11c   :  { %v2493_v42 = vpop.eup %2492  ;;  %v580_v47 = vadd.f32 1.0, %v2491_v39 }
 0x11d   :  { %v586_v48 = vadd.f32 1.0, %v2493_v42  ;;  %v2495_v49 = vpop.eup %2494 }
 0x11e   :  { %2498 = vrcp.f32 %v580_v47  ;;  %v2497_v50 = vpop.eup %2496  ;;  %v593_v62 = vadd.f32 1.0, %v2495_v49 }
 0x11f   :  { %2500 = vrcp.f32 %v586_v48 }
 0x120   :  { %2502 = vrcp.f32 %v593_v62 }
 0x128   :  { %v2499_v51 = vpop.eup %2498 }
 0x129   :  { %v2501_v52 = vpop.eup %2500  ;;  %v597_v55 = vmul.f32 %v2499_v51, %v2497_v50 }
 0x12a   :  { %v596_v63 = vmul.f32 0.0, %v2501_v52  ;;  %v2503_v2 = vpop.eup %2502 }
 0x12c   :  { %v2925_v1 = vadd.f32 %v597_v55, %v596_v63 }
 0x12e   :  { %2504 = vtanh.f32 %v2925_v1 }
 0x138   :  { %v2505_v5 = vpop.eup %2504 }
 0x139   :  { %v600_v11 = vmul.f32 %v2505_v5, %v2503_v2 }
 0x13b   :  { %673 = vmatmul.mubr.f32.vlgmr.msra.gmra.mrb[2].mxu0 %v600_v11  ;;  %744 = vmatmul.mubr.f32.vlgmr.msra.gmra.mrb[2].mxu1 %v600_v11 }
 0x13c   :  { %2038 = vmatpush1.bf16.msra.mxu0 %v2725_v14  ;;  %2070 = vmatpush1.bf16.msra.mxu1 %v2729_v17 }
 0x13d   :  { %2040 = vmatprep.subr.bf16.mxu0 %v2738_v25  ;;  %2072 = vmatprep.subr.bf16.mxu1 %v2740_v26 }
 0x13e   :  { %849 = vmatprep.mubr.f32.mxu0 %v2669_v0  ;;  %920 = vmatprep.mubr.f32.mxu1 %v2669_v0 }
 0x140   :  { %2042 = vmatpush1.bf16.msra.mxu0 %v2744_v29  ;;  %2074 = vmatpush1.bf16.msra.mxu1 %v2746_v30 }
 0x141   :  { %2044 = vmatprep.subr.bf16.mxu0 %v2757_v40  ;;  %2076 = vmatprep.subr.bf16.mxu1 %v2759_v41 }
 0x144   :  { %2046 = vmatpush1.bf16.msra.mxu0 %v2763_v44  ;;  %2078 = vmatpush1.bf16.msra.mxu1 %v2765_v45 }
 0x145   :  { %2048 = vmatprep.subr.bf16.mxu0 %v2776_v53  ;;  %2080 = vmatprep.subr.bf16.mxu1 %v2778_v54 }
 0x148   :  { %2050 = vmatpush1.bf16.msra.mxu0 %v2782_v57  ;;  %2082 = vmatpush1.bf16.msra.mxu1 %v2784_v58 }
 0x149   :  { %2052 = vmatprep.subr.bf16.mxu0 %v2795_v3  ;;  %2084 = vmatprep.subr.bf16.mxu1 %v2797_v4 }
 0x14c   :  { %2054 = vmatpush1.bf16.msra.mxu0 %v2801_v7  ;;  %2086 = vmatpush1.bf16.msra.mxu1 %v2803_v8 }
 0x14d   :  { %2056 = vmatprep.subr.bf16.mxu0 %v2814_v20  ;;  %2088 = vmatprep.subr.bf16.mxu1 %v2816_v21 }
 0x150   :  { %2058 = vmatpush1.bf16.msra.mxu0 %v2820_v24  ;;  %2090 = vmatpush1.bf16.msra.mxu1 %v2822_v27 }
 0x151   :  { %2060 = vmatprep.subr.bf16.mxu0 %v2833_v37  ;;  %2092 = vmatprep.subr.bf16.mxu1 %v2835_v38 }
 0x154   :  { %2062 = vmatpush1.bf16.msra.mxu0 %v2839_v43  ;;  %2094 = vmatpush1.bf16.msra.mxu1 %v2841_v46 }
 0x155   :  { %2064 = vmatprep.subr.bf16.mxu0 %v2852_v56  ;;  %2096 = vmatprep.subr.bf16.mxu1 %v2854_v59 }
 0x158   :  { %2066 = vmatpush1.bf16.msra.mxu0 %v2858_v60  ;;  %2098 = vmatpush1.bf16.msra.mxu1 %v2860_v61 }
 0x159   :  { %2100 = vmatprep.subr.bf16.mxu0 %v2719_v9  ;;  %2132 = vmatprep.subr.bf16.mxu1 %v2723_v13 }
 0x20e   :  { %v674_v12 = vpop.f32.mrb[2].mxu0  ;;  %v745_v15 = vpop.f32.mrb[2].mxu1 }
 0x20f   :  { %v2421_v16 = vadd.f32 %v674_v12, %v2913_v6  ;;  %v676_v18 = vpop.f32.mrb[3].mxu0  ;;  %v747_v19 = vpop.f32.mrb[3].mxu1  ;;  %v2437_v35 = vadd.f32 %v745_v15, %v2922_v34 }
 0x210   :  { %v2422_v22 = vadd.f32 %v676_v18, %v2915_v10  ;;  %v2438_v32 = vadd.f32 %v747_v19, %v2919_v31 }
 0x211   :  { %v1886_v23 = vmul.f32 -1.442695, %v2421_v16 }
 0x212   :  { %v1887_v28 = vmul.f32 -1.442695, %v2422_v22  ;;  %v1888_v33 = vmul.f32 -1.442695, %v2438_v32 }
 0x213   :  { %2506 = vpow2.f32 %v1886_v23 }
 0x214   :  { %2508 = vpow2.f32 %v1887_v28 }
 0x215   :  { %2510 = vpow2.f32 %v1888_v33 }
 0x216   :  { %2512 = vtanh.f32 %v2437_v35 }
 0x21d   :  { %v2507_v36 = vpop.eup %2506 }
 0x21e   :  { %v2509_v39 = vpop.eup %2508  ;;  %v757_v42 = vadd.f32 1.0, %v2507_v36 }
 0x21f   :  { %v763_v47 = vadd.f32 1.0, %v2509_v39  ;;  %v2511_v48 = vpop.eup %2510 }
 0x220   :  { %2514 = vrcp.f32 %v757_v42  ;;  %v2513_v49 = vpop.eup %2512  ;;  %v770_v55 = vadd.f32 1.0, %v2511_v48 }
 0x221   :  { %2516 = vrcp.f32 %v763_v47 }
 0x222   :  { %2518 = vrcp.f32 %v770_v55 }
 0x22a   :  { %v2515_v50 = vpop.eup %2514 }
 0x22b   :  { %v2517_v51 = vpop.eup %2516  ;;  %v774_v52 = vmul.f32 %v2515_v50, %v2513_v49 }
 0x22c   :  { %v773_v62 = vmul.f32 %v2517_v51, %v2925_v1  ;;  %v2519_v2 = vpop.eup %2518 }
 0x22e   :  { %v2967_v63 = vadd.f32 %v774_v52, %v773_v62 }
 0x230   :  { %2520 = vtanh.f32 %v2967_v63 }
 0x23a   :  { %v2521_v5 = vpop.eup %2520 }
 0x23b   :  { %v777_v11 = vmul.f32 %v2521_v5, %v2519_v2 }
 0x23d   :  { %850 = vmatmul.mubr.f32.vlgmr.msra.gmra.mrb[4].mxu0 %v777_v11  ;;  %921 = vmatmul.mubr.f32.vlgmr.msra.gmra.mrb[4].mxu1 %v777_v11 }
 0x23e   :  { %2102 = vmatpush1.bf16.msra.mxu0 %v2725_v14  ;;  %2134 = vmatpush1.bf16.msra.mxu1 %v2729_v17 }
 0x23f   :  { %2104 = vmatprep.subr.bf16.mxu0 %v2738_v25  ;;  %2136 = vmatprep.subr.bf16.mxu1 %v2740_v26 }
 0x240   :  { %1026 = vmatprep.mubr.f32.mxu0 %v2669_v0  ;;  %1097 = vmatprep.mubr.f32.mxu1 %v2669_v0 }
 0x242   :  { %2106 = vmatpush1.bf16.msra.mxu0 %v2744_v29  ;;  %2138 = vmatpush1.bf16.msra.mxu1 %v2746_v30 }
 0x243   :  { %2108 = vmatprep.subr.bf16.mxu0 %v2757_v40  ;;  %2140 = vmatprep.subr.bf16.mxu1 %v2759_v41 }
 0x246   :  { %2110 = vmatpush1.bf16.msra.mxu0 %v2763_v44  ;;  %2142 = vmatpush1.bf16.msra.mxu1 %v2765_v45 }
 0x247   :  { %2112 = vmatprep.subr.bf16.mxu0 %v2776_v53  ;;  %2144 = vmatprep.subr.bf16.mxu1 %v2778_v54 }
 0x24a   :  { %2114 = vmatpush1.bf16.msra.mxu0 %v2782_v57  ;;  %2146 = vmatpush1.bf16.msra.mxu1 %v2784_v58 }
 0x24b   :  { %2116 = vmatprep.subr.bf16.mxu0 %v2795_v3  ;;  %2148 = vmatprep.subr.bf16.mxu1 %v2797_v4 }
 0x24e   :  { %2118 = vmatpush1.bf16.msra.mxu0 %v2801_v7  ;;  %2150 = vmatpush1.bf16.msra.mxu1 %v2803_v8 }
 0x24f   :  { %2120 = vmatprep.subr.bf16.mxu0 %v2814_v20  ;;  %2152 = vmatprep.subr.bf16.mxu1 %v2816_v21 }
 0x252   :  { %2122 = vmatpush1.bf16.msra.mxu0 %v2820_v24  ;;  %2154 = vmatpush1.bf16.msra.mxu1 %v2822_v27 }
 0x253   :  { %2124 = vmatprep.subr.bf16.mxu0 %v2833_v37  ;;  %2156 = vmatprep.subr.bf16.mxu1 %v2835_v38 }
 0x256   :  { %2126 = vmatpush1.bf16.msra.mxu0 %v2839_v43  ;;  %2158 = vmatpush1.bf16.msra.mxu1 %v2841_v46 }
 0x257   :  { %2128 = vmatprep.subr.bf16.mxu0 %v2852_v56  ;;  %2160 = vmatprep.subr.bf16.mxu1 %v2854_v59 }
 0x25a   :  { %2130 = vmatpush1.bf16.msra.mxu0 %v2858_v60  ;;  %2162 = vmatpush1.bf16.msra.mxu1 %v2860_v61 }
 0x25b   :  { %2164 = vmatprep.subr.bf16.mxu0 %v2719_v9  ;;  %2196 = vmatprep.subr.bf16.mxu1 %v2723_v13 }
 0x310   :  { %v851_v1 = vpop.f32.mrb[4].mxu0  ;;  %v922_v12 = vpop.f32.mrb[4].mxu1 }
 0x311   :  { %v2423_v15 = vadd.f32 %v851_v1, %v2913_v6  ;;  %v853_v16 = vpop.f32.mrb[5].mxu0  ;;  %v924_v18 = vpop.f32.mrb[5].mxu1  ;;  %v2439_v33 = vadd.f32 %v922_v12, %v2922_v34 }
 0x312   :  { %v2424_v19 = vadd.f32 %v853_v16, %v2915_v10  ;;  %v2440_v28 = vadd.f32 %v924_v18, %v2919_v31 }
 0x313   :  { %v1889_v22 = vmul.f32 -1.442695, %v2423_v15 }
 0x314   :  { %v1890_v23 = vmul.f32 -1.442695, %v2424_v19  ;;  %v1891_v32 = vmul.f32 -1.442695, %v2440_v28 }
 0x315   :  { %2522 = vpow2.f32 %v1889_v22 }
 0x316   :  { %2524 = vpow2.f32 %v1890_v23 }
 0x317   :  { %2526 = vpow2.f32 %v1891_v32 }
 0x318   :  { %2528 = vtanh.f32 %v2439_v33 }
 0x31f   :  { %v2523_v35 = vpop.eup %2522 }
 0x320   :  { %v2525_v36 = vpop.eup %2524  ;;  %v934_v39 = vadd.f32 1.0, %v2523_v35 }
 0x321   :  { %v940_v42 = vadd.f32 1.0, %v2525_v36  ;;  %v2527_v47 = vpop.eup %2526 }
 0x322   :  { %2530 = vrcp.f32 %v934_v39  ;;  %v2529_v48 = vpop.eup %2528  ;;  %v947_v52 = vadd.f32 1.0, %v2527_v47 }
 0x323   :  { %2532 = vrcp.f32 %v940_v42 }
 0x324   :  { %2534 = vrcp.f32 %v947_v52 }
 0x32c   :  { %v2531_v49 = vpop.eup %2530 }
 0x32d   :  { %v2533_v50 = vpop.eup %2532  ;;  %v951_v51 = vmul.f32 %v2531_v49, %v2529_v48 }
 0x32e   :  { %v950_v55 = vmul.f32 %v2533_v50, %v2967_v63  ;;  %v2535_v2 = vpop.eup %2534 }
 0x330   :  { %v3009_v62 = vadd.f32 %v951_v51, %v950_v55 }
 0x332   :  { %2536 = vtanh.f32 %v3009_v62 }
 0x33c   :  { %v2537_v5 = vpop.eup %2536 }
 0x33d   :  { %v954_v11 = vmul.f32 %v2537_v5, %v2535_v2 }
 0x33f   :  { %1027 = vmatmul.mubr.f32.vlgmr.msra.gmra.mrb[6].mxu0 %v954_v11  ;;  %1098 = vmatmul.mubr.f32.vlgmr.msra.gmra.mrb[6].mxu1 %v954_v11 }
 0x340   :  { %2166 = vmatpush1.bf16.msra.mxu0 %v2725_v14  ;;  %2198 = vmatpush1.bf16.msra.mxu1 %v2729_v17 }
 0x341   :  { %2168 = vmatprep.subr.bf16.mxu0 %v2738_v25  ;;  %2200 = vmatprep.subr.bf16.mxu1 %v2740_v26 }
 0x342   :  { %1203 = vmatprep.mubr.f32.mxu0 %v2669_v0  ;;  %1274 = vmatprep.mubr.f32.mxu1 %v2669_v0 }
 0x344   :  { %2170 = vmatpush1.bf16.msra.mxu0 %v2744_v29  ;;  %2202 = vmatpush1.bf16.msra.mxu1 %v2746_v30 }
 0x345   :  { %2172 = vmatprep.subr.bf16.mxu0 %v2757_v40  ;;  %2204 = vmatprep.subr.bf16.mxu1 %v2759_v41 }
 0x348   :  { %2174 = vmatpush1.bf16.msra.mxu0 %v2763_v44  ;;  %2206 = vmatpush1.bf16.msra.mxu1 %v2765_v45 }
 0x349   :  { %2176 = vmatprep.subr.bf16.mxu0 %v2776_v53  ;;  %2208 = vmatprep.subr.bf16.mxu1 %v2778_v54 }
 0x34c   :  { %2178 = vmatpush1.bf16.msra.mxu0 %v2782_v57  ;;  %2210 = vmatpush1.bf16.msra.mxu1 %v2784_v58 }
 0x34d   :  { %2180 = vmatprep.subr.bf16.mxu0 %v2795_v3  ;;  %2212 = vmatprep.subr.bf16.mxu1 %v2797_v4 }
 0x350   :  { %2182 = vmatpush1.bf16.msra.mxu0 %v2801_v7  ;;  %2214 = vmatpush1.bf16.msra.mxu1 %v2803_v8 }
 0x351   :  { %2184 = vmatprep.subr.bf16.mxu0 %v2814_v20  ;;  %2216 = vmatprep.subr.bf16.mxu1 %v2816_v21 }
 0x354   :  { %2186 = vmatpush1.bf16.msra.mxu0 %v2820_v24  ;;  %2218 = vmatpush1.bf16.msra.mxu1 %v2822_v27 }
 0x355   :  { %2188 = vmatprep.subr.bf16.mxu0 %v2833_v37  ;;  %2220 = vmatprep.subr.bf16.mxu1 %v2835_v38 }
 0x358   :  { %2190 = vmatpush1.bf16.msra.mxu0 %v2839_v43  ;;  %2222 = vmatpush1.bf16.msra.mxu1 %v2841_v46 }
 0x359   :  { %2192 = vmatprep.subr.bf16.mxu0 %v2852_v56  ;;  %2224 = vmatprep.subr.bf16.mxu1 %v2854_v59 }
 0x35c   :  { %2194 = vmatpush1.bf16.msra.mxu0 %v2858_v60  ;;  %2226 = vmatpush1.bf16.msra.mxu1 %v2860_v61 }
 0x35d   :  { %2228 = vmatprep.subr.bf16.mxu0 %v2719_v9  ;;  %2260 = vmatprep.subr.bf16.mxu1 %v2723_v13 }
 0x412   :  { %v1028_v63 = vpop.f32.mrb[6].mxu0  ;;  %v1099_v1 = vpop.f32.mrb[6].mxu1 }
 0x413   :  { %v2425_v12 = vadd.f32 %v1028_v63, %v2913_v6  ;;  %v1030_v15 = vpop.f32.mrb[7].mxu0  ;;  %v1101_v16 = vpop.f32.mrb[7].mxu1  ;;  %v2441_v32 = vadd.f32 %v1099_v1, %v2922_v34 }
 0x414   :  { %v2426_v18 = vadd.f32 %v1030_v15, %v2915_v10  ;;  %v2442_v23 = vadd.f32 %v1101_v16, %v2919_v31 }
 0x415   :  { %v1892_v19 = vmul.f32 -1.442695, %v2425_v12 }
 0x416   :  { %v1893_v22 = vmul.f32 -1.442695, %v2426_v18  ;;  %v1894_v28 = vmul.f32 -1.442695, %v2442_v23 }
 0x417   :  { %2538 = vpow2.f32 %v1892_v19 }
 0x418   :  { %2540 = vpow2.f32 %v1893_v22 }
 0x419   :  { %2542 = vpow2.f32 %v1894_v28 }
 0x41a   :  { %2544 = vtanh.f32 %v2441_v32 }
 0x421   :  { %v2539_v33 = vpop.eup %2538 }
 0x422   :  { %v2541_v35 = vpop.eup %2540  ;;  %v1111_v36 = vadd.f32 1.0, %v2539_v33 }
 0x423   :  { %v1117_v39 = vadd.f32 1.0, %v2541_v35  ;;  %v2543_v42 = vpop.eup %2542 }
 0x424   :  { %2546 = vrcp.f32 %v1111_v36  ;;  %v2545_v47 = vpop.eup %2544  ;;  %v1124_v51 = vadd.f32 1.0, %v2543_v42 }
 0x425   :  { %2548 = vrcp.f32 %v1117_v39 }
 0x426   :  { %2550 = vrcp.f32 %v1124_v51 }
 0x42e   :  { %v2547_v48 = vpop.eup %2546 }
 0x42f   :  { %v2549_v49 = vpop.eup %2548  ;;  %v1128_v50 = vmul.f32 %v2547_v48, %v2545_v47 }
 0x430   :  { %v1127_v52 = vmul.f32 %v2549_v49, %v3009_v62  ;;  %v2551_v2 = vpop.eup %2550 }
 0x432   :  { %v3051_v55 = vadd.f32 %v1128_v50, %v1127_v52 }
 0x434   :  { %2552 = vtanh.f32 %v3051_v55 }
 0x43e   :  { %v2553_v5 = vpop.eup %2552 }
 0x43f   :  { %v1131_v11 = vmul.f32 %v2553_v5, %v2551_v2 }
 0x441   :  { %1204 = vmatmul.mubr.f32.vlgmr.msra.gmra.mrb[8].mxu0 %v1131_v11  ;;  %1275 = vmatmul.mubr.f32.vlgmr.msra.gmra.mrb[8].mxu1 %v1131_v11 }
 0x442   :  { %2230 = vmatpush1.bf16.msra.mxu0 %v2725_v14  ;;  %2262 = vmatpush1.bf16.msra.mxu1 %v2729_v17 }
 0x443   :  { %2232 = vmatprep.subr.bf16.mxu0 %v2738_v25  ;;  %2264 = vmatprep.subr.bf16.mxu1 %v2740_v26 }
 0x444   :  { %1380 = vmatprep.mubr.f32.mxu0 %v2669_v0  ;;  %1451 = vmatprep.mubr.f32.mxu1 %v2669_v0 }
 0x446   :  { %2234 = vmatpush1.bf16.msra.mxu0 %v2744_v29  ;;  %2266 = vmatpush1.bf16.msra.mxu1 %v2746_v30 }
 0x447   :  { %2236 = vmatprep.subr.bf16.mxu0 %v2757_v40  ;;  %2268 = vmatprep.subr.bf16.mxu1 %v2759_v41 }
 0x44a   :  { %2238 = vmatpush1.bf16.msra.mxu0 %v2763_v44  ;;  %2270 = vmatpush1.bf16.msra.mxu1 %v2765_v45 }
 0x44b   :  { %2240 = vmatprep.subr.bf16.mxu0 %v2776_v53  ;;  %2272 = vmatprep.subr.bf16.mxu1 %v2778_v54 }
 0x44e   :  { %2242 = vmatpush1.bf16.msra.mxu0 %v2782_v57  ;;  %2274 = vmatpush1.bf16.msra.mxu1 %v2784_v58 }
 0x44f   :  { %2244 = vmatprep.subr.bf16.mxu0 %v2795_v3  ;;  %2276 = vmatprep.subr.bf16.mxu1 %v2797_v4 }
 0x452   :  { %2246 = vmatpush1.bf16.msra.mxu0 %v2801_v7  ;;  %2278 = vmatpush1.bf16.msra.mxu1 %v2803_v8 }
 0x453   :  { %2248 = vmatprep.subr.bf16.mxu0 %v2814_v20  ;;  %2280 = vmatprep.subr.bf16.mxu1 %v2816_v21 }
 0x456   :  { %2250 = vmatpush1.bf16.msra.mxu0 %v2820_v24  ;;  %2282 = vmatpush1.bf16.msra.mxu1 %v2822_v27 }
 0x457   :  { %2252 = vmatprep.subr.bf16.mxu0 %v2833_v37  ;;  %2284 = vmatprep.subr.bf16.mxu1 %v2835_v38 }
 0x45a   :  { %2254 = vmatpush1.bf16.msra.mxu0 %v2839_v43  ;;  %2286 = vmatpush1.bf16.msra.mxu1 %v2841_v46 }
 0x45b   :  { %2256 = vmatprep.subr.bf16.mxu0 %v2852_v56  ;;  %2288 = vmatprep.subr.bf16.mxu1 %v2854_v59 }
 0x45e   :  { %2258 = vmatpush1.bf16.msra.mxu0 %v2858_v60  ;;  %2290 = vmatpush1.bf16.msra.mxu1 %v2860_v61 }
 0x45f   :  { %2292 = vmatprep.subr.bf16.mxu0 %v2719_v9  ;;  %2324 = vmatprep.subr.bf16.mxu1 %v2723_v13 }
 0x514   :  { %v1205_v62 = vpop.f32.mrb[8].mxu0  ;;  %v1276_v63 = vpop.f32.mrb[8].mxu1 }
 0x515   :  { %v2427_v1 = vadd.f32 %v1205_v62, %v2913_v6  ;;  %v1207_v12 = vpop.f32.mrb[9].mxu0  ;;  %v1278_v15 = vpop.f32.mrb[9].mxu1  ;;  %v2443_v28 = vadd.f32 %v1276_v63, %v2922_v34 }
 0x516   :  { %v2428_v16 = vadd.f32 %v1207_v12, %v2915_v10  ;;  %v2444_v22 = vadd.f32 %v1278_v15, %v2919_v31 }
 0x517   :  { %v1895_v18 = vmul.f32 -1.442695, %v2427_v1 }
 0x518   :  { %v1896_v19 = vmul.f32 -1.442695, %v2428_v16  ;;  %v1897_v23 = vmul.f32 -1.442695, %v2444_v22 }
 0x519   :  { %2554 = vpow2.f32 %v1895_v18 }
 0x51a   :  { %2556 = vpow2.f32 %v1896_v19 }
 0x51b   :  { %2558 = vpow2.f32 %v1897_v23 }
 0x51c   :  { %2560 = vtanh.f32 %v2443_v28 }
 0x523   :  { %v2555_v32 = vpop.eup %2554 }
 0x524   :  { %v2557_v33 = vpop.eup %2556  ;;  %v1288_v35 = vadd.f32 1.0, %v2555_v32 }
 0x525   :  { %v1294_v36 = vadd.f32 1.0, %v2557_v33  ;;  %v2559_v39 = vpop.eup %2558 }
 0x526   :  { %2562 = vrcp.f32 %v1288_v35  ;;  %v2561_v42 = vpop.eup %2560  ;;  %v1301_v50 = vadd.f32 1.0, %v2559_v39 }
 0x527   :  { %2564 = vrcp.f32 %v1294_v36 }
 0x528   :  { %2566 = vrcp.f32 %v1301_v50 }
 0x530   :  { %v2563_v47 = vpop.eup %2562 }
 0x531   :  { %v2565_v48 = vpop.eup %2564  ;;  %v1305_v49 = vmul.f32 %v2563_v47, %v2561_v42 }
 0x532   :  { %v1304_v51 = vmul.f32 %v2565_v48, %v3051_v55  ;;  %v2567_v2 = vpop.eup %2566 }
 0x534   :  { %v3093_v52 = vadd.f32 %v1305_v49, %v1304_v51 }
 0x536   :  { %2568 = vtanh.f32 %v3093_v52 }
 0x540   :  { %v2569_v5 = vpop.eup %2568 }
 0x541   :  { %v1308_v11 = vmul.f32 %v2569_v5, %v2567_v2 }
 0x543   :  { %1381 = vmatmul.mubr.f32.vlgmr.msra.gmra.mrb[10].mxu0 %v1308_v11  ;;  %1452 = vmatmul.mubr.f32.vlgmr.msra.gmra.mrb[10].mxu1 %v1308_v11 }
 0x544   :  { %2294 = vmatpush1.bf16.msra.mxu0 %v2725_v14  ;;  %2326 = vmatpush1.bf16.msra.mxu1 %v2729_v17 }
 0x545   :  { %2296 = vmatprep.subr.bf16.mxu0 %v2738_v25  ;;  %2328 = vmatprep.subr.bf16.mxu1 %v2740_v26 }
 0x546   :  { %1557 = vmatprep.mubr.f32.mxu0 %v2669_v0  ;;  %1628 = vmatprep.mubr.f32.mxu1 %v2669_v0 }
 0x548   :  { %2298 = vmatpush1.bf16.msra.mxu0 %v2744_v29  ;;  %2330 = vmatpush1.bf16.msra.mxu1 %v2746_v30 }
 0x549   :  { %2300 = vmatprep.subr.bf16.mxu0 %v2757_v40  ;;  %2332 = vmatprep.subr.bf16.mxu1 %v2759_v41 }
 0x54c   :  { %2302 = vmatpush1.bf16.msra.mxu0 %v2763_v44  ;;  %2334 = vmatpush1.bf16.msra.mxu1 %v2765_v45 }
 0x54d   :  { %2304 = vmatprep.subr.bf16.mxu0 %v2776_v53  ;;  %2336 = vmatprep.subr.bf16.mxu1 %v2778_v54 }
 0x550   :  { %2306 = vmatpush1.bf16.msra.mxu0 %v2782_v57  ;;  %2338 = vmatpush1.bf16.msra.mxu1 %v2784_v58 }
 0x551   :  { %2308 = vmatprep.subr.bf16.mxu0 %v2795_v3  ;;  %2340 = vmatprep.subr.bf16.mxu1 %v2797_v4 }
 0x554   :  { %2310 = vmatpush1.bf16.msra.mxu0 %v2801_v7  ;;  %2342 = vmatpush1.bf16.msra.mxu1 %v2803_v8 }
 0x555   :  { %2312 = vmatprep.subr.bf16.mxu0 %v2814_v20  ;;  %2344 = vmatprep.subr.bf16.mxu1 %v2816_v21 }
 0x558   :  { %2314 = vmatpush1.bf16.msra.mxu0 %v2820_v24  ;;  %2346 = vmatpush1.bf16.msra.mxu1 %v2822_v27 }
 0x559   :  { %2316 = vmatprep.subr.bf16.mxu0 %v2833_v37  ;;  %2348 = vmatprep.subr.bf16.mxu1 %v2835_v38 }
 0x55c   :  { %2318 = vmatpush1.bf16.msra.mxu0 %v2839_v43  ;;  %2350 = vmatpush1.bf16.msra.mxu1 %v2841_v46 }
 0x55d   :  { %2320 = vmatprep.subr.bf16.mxu0 %v2852_v56  ;;  %2352 = vmatprep.subr.bf16.mxu1 %v2854_v59 }
 0x560   :  { %2322 = vmatpush1.bf16.msra.mxu0 %v2858_v60  ;;  %2354 = vmatpush1.bf16.msra.mxu1 %v2860_v61 }
 0x561   :  { %2356 = vmatprep.subr.bf16.mxu0 %v2719_v9  ;;  %2388 = vmatprep.subr.bf16.mxu1 %v2723_v13 }
 0x616   :  { %v1382_v55 = vpop.f32.mrb[10].mxu0  ;;  %v1453_v62 = vpop.f32.mrb[10].mxu1 }
 0x617   :  { %v2429_v63 = vadd.f32 %v1382_v55, %v2913_v6  ;;  %v1384_v1 = vpop.f32.mrb[11].mxu0  ;;  %v1455_v12 = vpop.f32.mrb[11].mxu1  ;;  %v2445_v23 = vadd.f32 %v1453_v62, %v2922_v34 }
 0x618   :  { %v2430_v15 = vadd.f32 %v1384_v1, %v2915_v10  ;;  %v2446_v19 = vadd.f32 %v1455_v12, %v2919_v31 }
 0x619   :  { %v1898_v16 = vmul.f32 -1.442695, %v2429_v63 }
 0x61a   :  { %v1899_v18 = vmul.f32 -1.442695, %v2430_v15  ;;  %v1900_v22 = vmul.f32 -1.442695, %v2446_v19 }
 0x61b   :  { %2570 = vpow2.f32 %v1898_v16 }
 0x61c   :  { %2572 = vpow2.f32 %v1899_v18 }
 0x61d   :  { %2574 = vpow2.f32 %v1900_v22 }
 0x61e   :  { %2576 = vtanh.f32 %v2445_v23 }
 0x625   :  { %v2571_v9 = vpop.eup %2570 }
 0x626   :  { %v2573_v28 = vpop.eup %2572  ;;  %v1465_v13 = vadd.f32 1.0, %v2571_v9 }
 0x627   :  { %v1471_v32 = vadd.f32 1.0, %v2573_v28  ;;  %v2575_v33 = vpop.eup %2574 }
 0x628   :  { %2578 = vrcp.f32 %v1465_v13  ;;  %v2577_v35 = vpop.eup %2576  ;;  %v1478_v47 = vadd.f32 1.0, %v2575_v33 }
 0x629   :  { %2580 = vrcp.f32 %v1471_v32 }
 0x62a   :  { %2582 = vrcp.f32 %v1478_v47 }
 0x632   :  { %v2579_v36 = vpop.eup %2578 }
 0x633   :  { %v2581_v39 = vpop.eup %2580  ;;  %v1482_v42 = vmul.f32 %v2579_v36, %v2577_v35 }
 0x634   :  { %v1481_v48 = vmul.f32 %v2581_v39, %v3093_v52  ;;  %v2583_v50 = vpop.eup %2582 }
 0x636   :  { %v3135_v49 = vadd.f32 %v1482_v42, %v1481_v48 }
 0x638   :  { %2584 = vtanh.f32 %v3135_v49 }
 0x642   :  { %v2585_v51 = vpop.eup %2584 }
 0x643   :  { %v1485_v2 = vmul.f32 %v2585_v51, %v2583_v50 }
 0x645   :  { %1558 = vmatmul.mubr.f32.vlgmr.msra.gmra.mrb[12].mxu0 %v1485_v2  ;;  %1629 = vmatmul.mubr.f32.vlgmr.msra.gmra.mrb[12].mxu1 %v1485_v2 }
 0x646   :  { %2358 = vmatpush1.bf16.msra.mxu0 %v2725_v14  ;;  %2390 = vmatpush1.bf16.msra.mxu1 %v2729_v17 }
 0x647   :  { %2360 = vmatprep.subr.bf16.mxu0 %v2738_v25  ;;  %2392 = vmatprep.subr.bf16.mxu1 %v2740_v26 }
 0x648   :  { %1734 = vmatprep.mubr.f32.mxu0 %v2669_v0  ;;  %1805 = vmatprep.mubr.f32.mxu1 %v2669_v0 }
 0x64a   :  { %2362 = vmatpush1.bf16.msra.mxu0 %v2744_v29  ;;  %2394 = vmatpush1.bf16.msra.mxu1 %v2746_v30 }
 0x64b   :  { %2364 = vmatprep.subr.bf16.mxu0 %v2757_v40  ;;  %2396 = vmatprep.subr.bf16.mxu1 %v2759_v41 }
 0x64e   :  { %2366 = vmatpush1.bf16.msra.mxu0 %v2763_v44  ;;  %2398 = vmatpush1.bf16.msra.mxu1 %v2765_v45 }
 0x64f   :  { %2368 = vmatprep.subr.bf16.mxu0 %v2776_v53  ;;  %2400 = vmatprep.subr.bf16.mxu1 %v2778_v54 }
 0x652   :  { %2370 = vmatpush1.bf16.msra.mxu0 %v2782_v57  ;;  %2402 = vmatpush1.bf16.msra.mxu1 %v2784_v58 }
 0x653   :  { %2372 = vmatprep.subr.bf16.mxu0 %v2795_v3  ;;  %2404 = vmatprep.subr.bf16.mxu1 %v2797_v4 }
 0x656   :  { %2374 = vmatpush1.bf16.msra.mxu0 %v2801_v7  ;;  %2406 = vmatpush1.bf16.msra.mxu1 %v2803_v8 }
 0x657   :  { %2376 = vmatprep.subr.bf16.mxu0 %v2814_v20  ;;  %2408 = vmatprep.subr.bf16.mxu1 %v2816_v21 }
 0x65a   :  { %2378 = vmatpush1.bf16.msra.mxu0 %v2820_v24  ;;  %2410 = vmatpush1.bf16.msra.mxu1 %v2822_v27 }
 0x65b   :  { %2380 = vmatprep.subr.bf16.mxu0 %v2833_v37  ;;  %2412 = vmatprep.subr.bf16.mxu1 %v2835_v38 }
 0x65e   :  { %2382 = vmatpush1.bf16.msra.mxu0 %v2839_v43  ;;  %2414 = vmatpush1.bf16.msra.mxu1 %v2841_v46 }
 0x65f   :  { %2384 = vmatprep.subr.bf16.mxu0 %v2852_v56  ;;  %2416 = vmatprep.subr.bf16.mxu1 %v2854_v59 }
 0x662   :  { %2386 = vmatpush1.bf16.msra.mxu0 %v2858_v60  ;;  %2418 = vmatpush1.bf16.msra.mxu1 %v2860_v61 }
 0x718   :  { %v1559_v0 = vpop.f32.mrb[12].mxu0  ;;  %v1630_v14 = vpop.f32.mrb[12].mxu1 }
 0x719   :  { %v2431_v17 = vadd.f32 %v1559_v0, %v2913_v6  ;;  %v1561_v25 = vpop.f32.mrb[13].mxu0  ;;  %v1632_v26 = vpop.f32.mrb[13].mxu1  ;;  %v2447_v45 = vadd.f32 %v1630_v14, %v2922_v34 }
 0x71a   :  { %v2432_v29 = vadd.f32 %v1561_v25, %v2915_v10  ;;  %v2448_v41 = vadd.f32 %v1632_v26, %v2919_v31 }
 0x71b   :  { %v1901_v30 = vmul.f32 -1.442695, %v2431_v17 }
 0x71c   :  { %v1902_v40 = vmul.f32 -1.442695, %v2432_v29  ;;  %v1903_v44 = vmul.f32 -1.442695, %v2448_v41 }
 0x71d   :  { %2586 = vpow2.f32 %v1901_v30 }
 0x71e   :  { %2588 = vpow2.f32 %v1902_v40 }
 0x71f   :  { %2590 = vpow2.f32 %v1903_v44 }
 0x720   :  { %2592 = vtanh.f32 %v2447_v45 }
 0x727   :  { %v2587_v53 = vpop.eup %2586 }
 0x728   :  { %v2589_v54 = vpop.eup %2588  ;;  %v1642_v57 = vadd.f32 1.0, %v2587_v53 }
 0x729   :  { %v1648_v58 = vadd.f32 1.0, %v2589_v54  ;;  %v2591_v3 = vpop.eup %2590 }
 0x72a   :  { %2594 = vrcp.f32 %v1642_v57  ;;  %v2593_v4 = vpop.eup %2592  ;;  %v1655_v21 = vadd.f32 1.0, %v2591_v3 }
 0x72b   :  { %2596 = vrcp.f32 %v1648_v58 }
 0x72c   :  { %2598 = vrcp.f32 %v1655_v21 }
 0x734   :  { %v2595_v7 = vpop.eup %2594 }
 0x735   :  { %v2597_v8 = vpop.eup %2596  ;;  %v1659_v20 = vmul.f32 %v2595_v7, %v2593_v4 }
 0x736   :  { %v1658_v24 = vmul.f32 %v2597_v8, %v3135_v49  ;;  %v2599_v37 = vpop.eup %2598 }
 0x738   :  { %v1660_v27 = vadd.f32 %v1659_v20, %v1658_v24 }
 0x73a   :  { %2600 = vtanh.f32 %v1660_v27 }
 0x744   :  { %v2601_v38 = vpop.eup %2600 }
 0x745   :  { %v1662_v43 = vmul.f32 %v2601_v38, %v2599_v37 }
 0x747   :  { %1735 = vmatmul.mubr.f32.vlgmr.msra.gmra.mrb[14].mxu0 %v1662_v43  ;;  %1806 = vmatmul.mubr.f32.vlgmr.msra.gmra.mrb[14].mxu1 %v1662_v43 }
 0x81a   :  { %v1736_v46 = vpop.f32.mrb[14].mxu0  ;;  %v1807_v56 = vpop.f32.mrb[14].mxu1 }
 0x81b   :  { %v2433_v59 = vadd.f32 %v1736_v46, %v2913_v6  ;;  %v1738_v60 = vpop.f32.mrb[15].mxu0  ;;  %v1809_v61 = vpop.f32.mrb[15].mxu1  ;;  %v2449_v63 = vadd.f32 %v1807_v56, %v2922_v34 }
 0x81c   :  { %v2434_v52 = vadd.f32 %v1738_v60, %v2915_v10  ;;  %v2450_v55 = vadd.f32 %v1809_v61, %v2919_v31 }
 0x81d   :  { %v1904_v5 = vmul.f32 -1.442695, %v2433_v59 }
 0x81e   :  { %v1905_v11 = vmul.f32 -1.442695, %v2434_v52  ;;  %v1906_v62 = vmul.f32 -1.442695, %v2450_v55 }
 0x81f   :  { %2602 = vpow2.f32 %v1904_v5 }
 0x820   :  { %2604 = vpow2.f32 %v1905_v11 }
 0x821   :  { %2606 = vpow2.f32 %v1906_v62 }
 0x822   :  { %2608 = vtanh.f32 %v2449_v63 }
 0x829   :  { %v2603_v1 = vpop.eup %2602 }
 0x82a   :  { %v2605_v12 = vpop.eup %2604  ;;  %v1819_v15 = vadd.f32 1.0, %v2603_v1 }
 0x82b   :  { %v1825_v16 = vadd.f32 1.0, %v2605_v12  ;;  %v2607_v6 = vpop.eup %2606 }
 0x82c   :  { %2610 = vrcp.f32 %v1819_v15  ;;  %v2609_v18 = vpop.eup %2608  ;;  %v1832_v23 = vadd.f32 1.0, %v2607_v6 }
 0x82d   :  { %2612 = vrcp.f32 %v1825_v16 }
 0x82e   :  { %2614 = vrcp.f32 %v1832_v23 }
 0x836   :  { %v2611_v10 = vpop.eup %2610 }
 0x837   :  { %v2613_v19 = vpop.eup %2612  ;;  %v1836_v22 = vmul.f32 %v2611_v10, %v2609_v18 }
 0x838   :  { %v1835_v9 = vmul.f32 %v2613_v19, %v1660_v27  ;;  %v2615_v31 = vpop.eup %2614 }
 0x83a   :  { %v1837_v28 = vadd.f32 %v1836_v22, %v1835_v9 }
 0x83c   :  { %2616 = vtanh.f32 %v1837_v28 }
 0x846   :  { %v2617_v34 = vpop.eup %2616 }
 0x847   :  { %v1839_v13 = vmul.f32 %v2617_v34, %v2615_v31 }
 0x849   :  { %1840 = vst [vmem:[#allocation6] sm:$0xff] %v1839_v13 }
 0x84a   :  { %2651 = shalt.err (!%p2648_p12)
}
 0x84b   :  { %s2652_s26 = scalar_lea.hbm %s3195_s4, 128 }
 0x84c   :  { %p2653_p13 = scmp.ne.s32.totalorder %s3195_s4, %s2652_s26  ;;  %p2656_p0 = scmp.lt.u32.totalorder %s2652_s26, %s3195_s4 }
 0x84e   :  { %p2658_p1 = pnand %p2656_p0, %p2653_p13 }
 0x850   :  { %2661 = shalt.err (!%p2658_p1)
}
 0x851   :  { %1850 = dma.vmem_to_hbm [thread:$0]  %s1848_s22, 128, %s3195_s4, [#allocation5]  }
 0x852   :  { %2664 = dma.done.wait [#allocation5], 128  }
 0x853   :  { %2665 = vsyncadd [#allocation5], 4294967168 }
 0x854   :  { %1854 = vsyncpa [#allocation4], 1 }
 0x855   :  { %1855 = vsyncpa [#allocation5], 1 }

</bundles_post_ra>
